<compile_context>
chip_gen: v7x
topology: tpu7x:2x2x1
jax: 0.10.0
libtpu: 0.0.40
codegen_flags: <defaults>
</compile_context>

<pallas_src>
import functools

import jax
import jax.numpy as jnp
import numpy as np
from jax.experimental import pallas as pl
from jax.experimental.pallas import tpu as pltpu


def _fused_kernel(x1_ref, x3_ref, w1_ref, b1_ref, w2_ref, b2_ref, w3_ref,
                  b3_ref, wfc_ref, b4_ref, mask_ref, o_ref, im2_ref, lhs_ref,
                  *, cout, cp, k2, q1, q2, stride1, n_valid, eps):
    batch = x1_ref.shape[0]
    inv_n = 1.0 / float(n_valid)

    # Hoisted weight loads / bias broadcasts (shared by the unrolled batch loop).
    w1 = w1_ref[...]                                    # (cp, cin*k1*k1)
    w2 = w2_ref[...]                                    # (cp, k2*k2*cp)
    w3 = w3_ref[...]                                    # (cp, cin*k3*k3)
    b1b = jnp.broadcast_to(b1_ref[...], (cp, q1))
    b2b = jnp.broadcast_to(b2_ref[...], (cp, q2))
    b3b = jnp.broadcast_to(b3_ref[...], (cp, q2))
    b4 = b4_ref[...]                                    # (1, nout)
    mask = mask_ref[...]                                # (1, q2)

    for b in range(batch):                              # tiny batch -> unrolled
        # ---- conv1: ONE matmul on the host-built im2col, + bias + relu ------
        h1 = jnp.maximum(
            jnp.dot(w1, x1_ref[b], preferred_element_type=jnp.float32) + b1b,
            0.0)                                        # (cp, q1) dense 14x14

        # ---- conv2 im2col built in-kernel: k2*k2 shifted copies of h1 -------
        # stacked on sublane-aligned (cp-row) blocks of the scratch buffer.
        for dy in range(k2):
            for dx in range(k2):
                t = dy * k2 + dx
                off = dy * stride1 + dx                 # off + q2 == q1 exactly
                im2_ref[t * cp:(t + 1) * cp, :] = h1[:, off:off + q2]

        # ---- conv2: ONE matmul, + bias ---------------------------------------
        y2 = jnp.dot(w2, im2_ref[...], preferred_element_type=jnp.float32) + b2b

        # ---- shortcut conv3: ONE matmul + bias + InstanceNorm ----------------
        # (statistics over the 144 valid columns only; wrap columns masked)
        s = jnp.dot(w3, x3_ref[b], preferred_element_type=jnp.float32) + b3b
        mean = jnp.sum(s * mask, axis=1, keepdims=True) * inv_n
        cen = (s - mean) * mask
        var = jnp.sum(cen * cen, axis=1, keepdims=True) * inv_n   # biased var
        s = (s - mean) * jax.lax.rsqrt(var + eps)

        # ---- residual add + relu --------------------------------------------
        act = jnp.maximum(y2 + s, 0.0)                  # (cp, q2)

        # ---- flatten the `cout` real channels into one lane row of the FC LHS
        # (channel-major; wrap columns carry zero FC weight, so they are inert)
        for c in range(cout):
            lhs_ref[b:b + 1, c * q2:(c + 1) * q2] = act[c:c + 1, :]

    # ---- fully-connected: ONE (B, cout*q2) @ (cout*q2, nout) matmul for the
    # whole batch, single lane-dense (B, nout) store. --------------------------
    o_ref[...] = (jnp.dot(lhs_ref[...], wfc_ref[...],
                          preferred_element_type=jnp.float32) + b4)


def _im2col_dense(x, k, oh, ow):
    # (B, C, H, W) -> (B, C*k*k, oh*ow); row order c*k*k + dy*k + dx.
    B, C = x.shape[0], x.shape[1]
    cols = [x[:, :, dy:dy + oh, dx:dx + ow].reshape(B, C, oh * ow)
            for dy in range(k) for dx in range(k)]
    return jnp.stack(cols, axis=2).reshape(B, C * k * k, oh * ow)


def _im2col_wrap(x, k, oh, ow, stride, q):
    # Like _im2col_dense, but columns laid out with row stride `stride` (wrap
    # columns zero-filled), truncated to q columns.
    B, C = x.shape[0], x.shape[1]
    cols = []
    for dy in range(k):
        for dx in range(k):
            p = x[:, :, dy:dy + oh, dx:dx + ow]
            p = jnp.pad(p, ((0, 0), (0, 0), (0, 0), (0, stride - ow)))
            cols.append(p.reshape(B, C, oh * stride)[:, :, :q])
    return jnp.stack(cols, axis=2).reshape(B, C * k * k, q)


@jax.jit
def residual_block_low_forward(x, params):
    f1, b1, f2, b2, f3, b3, w_fc, b4 = params
    B, cin, H, W = x.shape
    cout = f1.shape[0]
    k1, k2, k3 = f1.shape[2], f2.shape[2], f3.shape[2]
    nout = w_fc.shape[1]

    h1d, w1d = H - k1 + 1, W - k1 + 1            # conv1 output (14, 14)
    h2d, w2d = h1d - k2 + 1, w1d - k2 + 1        # conv2 output (12, 12)
    assert (H - k3 + 1, W - k3 + 1) == (h2d, w2d)    # shortcut matches conv2
    assert w_fc.shape[0] == cout * h2d * w2d         # torch reshape to 1728

    q1 = h1d * w1d                               # 196 dense columns after conv1
    stride1 = w1d                                # row stride of the stage-2 layout
    q2 = (h2d - 1) * stride1 + w2d               # 166 wrap-layout columns
    assert (k2 - 1) * (stride1 + 1) + q2 == q1   # conv2 tap slices fit exactly
    cp = ((cout + 7) // 8) * 8                   # out-channels padded to sublanes

    # -------- host/XLA-side layout plumbing (tiny, inside the same jit) -------
    x1 = _im2col_dense(x, k1, h1d, w1d)                  # (B, cin*k1*k1, q1)
    x3 = _im2col_wrap(x, k3, h2d, w2d, stride1, q2)      # (B, cin*k3*k3, q2)

    pad_c = ((0, cp - cout), (0, 0))
    w1p = jnp.pad(f1.reshape(cout, -1), pad_c)           # (cp, cin*k1*k1)
    w3p = jnp.pad(f3.reshape(cout, -1), pad_c)           # (cp, cin*k3*k3)
    w2t = jnp.pad(jnp.transpose(f2, (0, 2, 3, 1)),       # (o, dy, dx, i)
                  ((0, cp - cout), (0, 0), (0, 0), (0, cp - cout)))
    w2p = w2t.reshape(cp, k2 * k2 * cp)                  # (cp, k2*k2*cp)

    b1c = jnp.pad(b1.reshape(cout, 1), pad_c)
    b2c = jnp.pad(b2.reshape(cout, 1), pad_c)
    b3c = jnp.pad(b3.reshape(cout, 1), pad_c)
    b4r = b4.reshape(1, nout)

    # FC weight -> (cout*q2, nout) in the wrap layout; zeros at wrap columns.
    wr = w_fc.reshape(cout, h2d, w2d, nout)
    wr = jnp.pad(wr, ((0, 0), (0, 0), (0, stride1 - w2d), (0, 0)))
    wfc_k = wr.reshape(cout, h2d * stride1, nout)[:, :q2, :]
    wfc_k = wfc_k.reshape(cout * q2, nout)

    cols = np.arange(q2)
    mask = jnp.asarray(((cols % stride1) < w2d).astype(np.float32).reshape(1, q2))

    kernel = functools.partial(
        _fused_kernel, cout=cout, cp=cp, k2=k2, q1=q1, q2=q2,
        stride1=stride1, n_valid=h2d * w2d, eps=0.01)

    vmem = pl.BlockSpec(memory_space=pltpu.MemorySpace.VMEM)
    return pl.pallas_call(
        kernel,
        out_shape=jax.ShapeDtypeStruct((B, nout), jnp.float32),
        in_specs=[vmem] * 11,
        out_specs=vmem,
        scratch_shapes=[pltpu.VMEM((k2 * k2 * cp, q2), jnp.float32),   # im2col2
                        pltpu.VMEM((B, cout * q2), jnp.float32)],      # FC LHS
    )(x1, x3, w1p, b1c, w2p, b2c, w3p, b3c, wfc_k, b4r, mask)


def _reference_forward(x, params):
    """Pure-JAX replica of ResidualBlock_low.forward (for verification)."""
    f1, b1, f2, b2, f3, b3, w_fc, b4 = params
    dn = ("NCHW", "OIHW", "NCHW")
    conv = lambda a, f: jax.lax.conv_general_dilated(
        a, f, window_strides=(1, 1), padding="VALID", dimension_numbers=dn)
    y = jnp.maximum(conv(x, f1) + b1[None, :, None, None], 0.0)
    y = conv(y, f2) + b2[None, :, None, None]
    s = conv(x, f3) + b3[None, :, None, None]
    mu = jnp.mean(s, axis=(2, 3), keepdims=True)
    var = jnp.var(s, axis=(2, 3), keepdims=True)     # biased, like InstanceNorm2d
    s = (s - mu) / jnp.sqrt(var + 0.01)
    y = jnp.maximum(y + s, 0.0)
    y = y.reshape(y.shape[0], -1)                    # (B, cout*h2*w2)
    return y @ w_fc + b4[None, :]


if __name__ == "__main__":
    key = jax.random.PRNGKey(0)
    ks = jax.random.split(key, 9)

    # batch=2, in-channels=4, spatial 16x16, outchannel=12:
    # 16 -(3x3)-> 14 -(3x3)-> 12  =>  12*12*12 = 1728 flattened (matches the module).
    B, Cin, H, W = 2, 4, 16, 16
    C, Nout = 12, 128

    x = jax.random.normal(ks[0], (B, Cin, H, W), jnp.float32)
    params = (
        jax.random.normal(ks[1], (C, Cin, 3, 3), jnp.float32) * 0.2,        # filter1
        jax.random.normal(ks[2], (C,), jnp.float32) * 0.1,                  # bias1
        jax.random.normal(ks[3], (C, C, 3, 3), jnp.float32) * 0.1,          # filter2
        jax.random.normal(ks[4], (C,), jnp.float32) * 0.1,                  # bias2
        jax.random.normal(ks[5], (C, Cin, 5, 5), jnp.float32) * 0.1,        # filter3
        jax.random.normal(ks[6], (C,), jnp.float32) * 0.1,                  # bias3
        jax.random.normal(ks[7], (C * 12 * 12, Nout), jnp.float32) * 0.05,  # weight
        jax.random.normal(ks[8], (Nout,), jnp.float32) * 0.1,               # bias4
    )

    out = residual_block_low_forward(x, params)
    out = jax.block_until_ready(out)

    ref = _reference_forward(x, params)
    assert out.shape == ref.shape == (B, Nout)
    assert jnp.allclose(out, ref, atol=1e-3, rtol=1e-3), float(jnp.max(jnp.abs(out - ref)))

    print("KERNEL_OK")
</pallas_src>

<mosaic_0001>
module attributes {stable_mosaic.version = 11 : i64} {
  func.func @_fused_kernel(%arg0: memref<2x36x196xf32, #tpu.memory_space<vmem>>, %arg1: memref<2x100x166xf32, #tpu.memory_space<vmem>>, %arg2: memref<16x36xf32, #tpu.memory_space<vmem>>, %arg3: memref<16x1xf32, #tpu.memory_space<vmem>>, %arg4: memref<16x144xf32, #tpu.memory_space<vmem>>, %arg5: memref<16x1xf32, #tpu.memory_space<vmem>>, %arg6: memref<16x100xf32, #tpu.memory_space<vmem>>, %arg7: memref<16x1xf32, #tpu.memory_space<vmem>>, %arg8: memref<1992x128xf32, #tpu.memory_space<vmem>>, %arg9: memref<1x128xf32, #tpu.memory_space<vmem>>, %arg10: memref<1x166xf32, #tpu.memory_space<vmem>>, %arg11: memref<2x128xf32, #tpu.memory_space<vmem>>, %arg12: memref<144x166xf32, #tpu.memory_space<vmem>>, %arg13: memref<2x1992xf32, #tpu.memory_space<vmem>>) attributes {dimension_semantics = [], scalar_prefetch = 0 : i64, scratch_operands = 2 : i64, tpu.core_type = #tpu.core_type<tc>} {
    %c0 = arith.constant 0 : index
    %c0_0 = arith.constant 0 : index
    %0 = vector.load %arg2[%c0, %c0_0] : memref<16x36xf32, #tpu.memory_space<vmem>>, vector<16x36xf32>
    %c0_1 = arith.constant 0 : index
    %c0_2 = arith.constant 0 : index
    %1 = vector.load %arg4[%c0_1, %c0_2] : memref<16x144xf32, #tpu.memory_space<vmem>>, vector<16x144xf32>
    %c0_3 = arith.constant 0 : index
    %c0_4 = arith.constant 0 : index
    %2 = vector.load %arg6[%c0_3, %c0_4] : memref<16x100xf32, #tpu.memory_space<vmem>>, vector<16x100xf32>
    %c0_5 = arith.constant 0 : index
    %c0_6 = arith.constant 0 : index
    %3 = vector.load %arg3[%c0_5, %c0_6] : memref<16x1xf32, #tpu.memory_space<vmem>>, vector<16x1xf32>
    %4 = vector.shape_cast %3 : vector<16x1xf32> to vector<16x1xf32>
    %5 = vector.broadcast %4 : vector<16x1xf32> to vector<16x196xf32>
    %c0_7 = arith.constant 0 : index
    %c0_8 = arith.constant 0 : index
    %6 = vector.load %arg5[%c0_7, %c0_8] : memref<16x1xf32, #tpu.memory_space<vmem>>, vector<16x1xf32>
    %7 = vector.shape_cast %6 : vector<16x1xf32> to vector<16x1xf32>
    %8 = vector.broadcast %7 : vector<16x1xf32> to vector<16x166xf32>
    %c0_9 = arith.constant 0 : index
    %c0_10 = arith.constant 0 : index
    %9 = vector.load %arg7[%c0_9, %c0_10] : memref<16x1xf32, #tpu.memory_space<vmem>>, vector<16x1xf32>
    %10 = vector.shape_cast %9 : vector<16x1xf32> to vector<16x1xf32>
    %11 = vector.broadcast %10 : vector<16x1xf32> to vector<16x166xf32>
    %c0_11 = arith.constant 0 : index
    %c0_12 = arith.constant 0 : index
    %12 = vector.load %arg9[%c0_11, %c0_12] : memref<1x128xf32, #tpu.memory_space<vmem>>, vector<1x128xf32>
    %c0_13 = arith.constant 0 : index
    %c0_14 = arith.constant 0 : index
    %13 = vector.load %arg10[%c0_13, %c0_14] : memref<1x166xf32, #tpu.memory_space<vmem>>, vector<1x166xf32>
    %c0_15 = arith.constant 0 : index
    %c0_16 = arith.constant 0 : index
    %c0_17 = arith.constant 0 : index
    %14 = vector.load %arg0[%c0_15, %c0_16, %c0_17] : memref<2x36x196xf32, #tpu.memory_space<vmem>>, vector<1x36x196xf32>
    %15 = vector.shape_cast %14 : vector<1x36x196xf32> to vector<36x196xf32>
    %cst = arith.constant dense<0.000000e+00> : vector<16x196xf32>
    %16 = tpu.matmul %0, %15, %cst {dimension_numbers = #tpu.dot_dimension_numbers<[1], [0], [0], [1], [0, 0, 1, 1], [], []>} : vector<16x36xf32>, vector<36x196xf32>, vector<16x196xf32> -> vector<16x196xf32>
    %17 = arith.addf %16, %5 : vector<16x196xf32>
    %cst_18 = arith.constant 0.000000e+00 : f32
    %18 = vector.broadcast %cst_18 : f32 to vector<16x196xf32>
    %19 = arith.maximumf %17, %18 : vector<16x196xf32>
    %20 = vector.extract_strided_slice %19 {offsets = [0, 0], sizes = [16, 166], strides = [1, 1]} : vector<16x196xf32> to vector<16x166xf32>
    %c0_19 = arith.constant 0 : index
    %c0_20 = arith.constant 0 : index
    %21 = vector.load %arg12[%c0_19, %c0_20] : memref<144x166xf32, #tpu.memory_space<vmem>>, vector<16x166xf32>
    tpu.vector_store %arg12[%c0_19, %c0_20], %20 {strides = array<i32>} : memref<144x166xf32, #tpu.memory_space<vmem>>, vector<16x166xf32>,
    %22 = vector.extract_strided_slice %19 {offsets = [0, 1], sizes = [16, 166], strides = [1, 1]} : vector<16x196xf32> to vector<16x166xf32>
    %c16 = arith.constant 16 : index
    %c0_21 = arith.constant 0 : index
    %23 = vector.load %arg12[%c16, %c0_21] : memref<144x166xf32, #tpu.memory_space<vmem>>, vector<16x166xf32>
    tpu.vector_store %arg12[%c16, %c0_21], %22 {strides = array<i32>} : memref<144x166xf32, #tpu.memory_space<vmem>>, vector<16x166xf32>,
    %24 = vector.extract_strided_slice %19 {offsets = [0, 2], sizes = [16, 166], strides = [1, 1]} : vector<16x196xf32> to vector<16x166xf32>
    %c32 = arith.constant 32 : index
    %c0_22 = arith.constant 0 : index
    %25 = vector.load %arg12[%c32, %c0_22] : memref<144x166xf32, #tpu.memory_space<vmem>>, vector<16x166xf32>
    tpu.vector_store %arg12[%c32, %c0_22], %24 {strides = array<i32>} : memref<144x166xf32, #tpu.memory_space<vmem>>, vector<16x166xf32>,
    %26 = vector.extract_strided_slice %19 {offsets = [0, 14], sizes = [16, 166], strides = [1, 1]} : vector<16x196xf32> to vector<16x166xf32>
    %c48 = arith.constant 48 : index
    %c0_23 = arith.constant 0 : index
    %27 = vector.load %arg12[%c48, %c0_23] : memref<144x166xf32, #tpu.memory_space<vmem>>, vector<16x166xf32>
    tpu.vector_store %arg12[%c48, %c0_23], %26 {strides = array<i32>} : memref<144x166xf32, #tpu.memory_space<vmem>>, vector<16x166xf32>,
    %28 = vector.extract_strided_slice %19 {offsets = [0, 15], sizes = [16, 166], strides = [1, 1]} : vector<16x196xf32> to vector<16x166xf32>
    %c64 = arith.constant 64 : index
    %c0_24 = arith.constant 0 : index
    %29 = vector.load %arg12[%c64, %c0_24] : memref<144x166xf32, #tpu.memory_space<vmem>>, vector<16x166xf32>
    tpu.vector_store %arg12[%c64, %c0_24], %28 {strides = array<i32>} : memref<144x166xf32, #tpu.memory_space<vmem>>, vector<16x166xf32>,
    %30 = vector.extract_strided_slice %19 {offsets = [0, 16], sizes = [16, 166], strides = [1, 1]} : vector<16x196xf32> to vector<16x166xf32>
    %c80 = arith.constant 80 : index
    %c0_25 = arith.constant 0 : index
    %31 = vector.load %arg12[%c80, %c0_25] : memref<144x166xf32, #tpu.memory_space<vmem>>, vector<16x166xf32>
    tpu.vector_store %arg12[%c80, %c0_25], %30 {strides = array<i32>} : memref<144x166xf32, #tpu.memory_space<vmem>>, vector<16x166xf32>,
    %32 = vector.extract_strided_slice %19 {offsets = [0, 28], sizes = [16, 166], strides = [1, 1]} : vector<16x196xf32> to vector<16x166xf32>
    %c96 = arith.constant 96 : index
    %c0_26 = arith.constant 0 : index
    %33 = vector.load %arg12[%c96, %c0_26] : memref<144x166xf32, #tpu.memory_space<vmem>>, vector<16x166xf32>
    tpu.vector_store %arg12[%c96, %c0_26], %32 {strides = array<i32>} : memref<144x166xf32, #tpu.memory_space<vmem>>, vector<16x166xf32>,
    %34 = vector.extract_strided_slice %19 {offsets = [0, 29], sizes = [16, 166], strides = [1, 1]} : vector<16x196xf32> to vector<16x166xf32>
    %c112 = arith.constant 112 : index
    %c0_27 = arith.constant 0 : index
    %35 = vector.load %arg12[%c112, %c0_27] : memref<144x166xf32, #tpu.memory_space<vmem>>, vector<16x166xf32>
    tpu.vector_store %arg12[%c112, %c0_27], %34 {strides = array<i32>} : memref<144x166xf32, #tpu.memory_space<vmem>>, vector<16x166xf32>,
    %36 = vector.extract_strided_slice %19 {offsets = [0, 30], sizes = [16, 166], strides = [1, 1]} : vector<16x196xf32> to vector<16x166xf32>
    %c128 = arith.constant 128 : index
    %c0_28 = arith.constant 0 : index
    %37 = vector.load %arg12[%c128, %c0_28] : memref<144x166xf32, #tpu.memory_space<vmem>>, vector<16x166xf32>
    tpu.vector_store %arg12[%c128, %c0_28], %36 {strides = array<i32>} : memref<144x166xf32, #tpu.memory_space<vmem>>, vector<16x166xf32>,
    %c0_29 = arith.constant 0 : index
    %c0_30 = arith.constant 0 : index
    %38 = vector.load %arg12[%c0_29, %c0_30] : memref<144x166xf32, #tpu.memory_space<vmem>>, vector<144x166xf32>
    %cst_31 = arith.constant dense<0.000000e+00> : vector<16x166xf32>
    %39 = tpu.matmul %1, %38, %cst_31 {dimension_numbers = #tpu.dot_dimension_numbers<[1], [0], [0], [1], [0, 0, 1, 1], [], []>} : vector<16x144xf32>, vector<144x166xf32>, vector<16x166xf32> -> vector<16x166xf32>
    %40 = arith.addf %39, %8 : vector<16x166xf32>
    %c0_32 = arith.constant 0 : index
    %c0_33 = arith.constant 0 : index
    %c0_34 = arith.constant 0 : index
    %41 = vector.load %arg1[%c0_32, %c0_33, %c0_34] : memref<2x100x166xf32, #tpu.memory_space<vmem>>, vector<1x100x166xf32>
    %42 = vector.shape_cast %41 : vector<1x100x166xf32> to vector<100x166xf32>
    %cst_35 = arith.constant dense<0.000000e+00> : vector<16x166xf32>
    %43 = tpu.matmul %2, %42, %cst_35 {dimension_numbers = #tpu.dot_dimension_numbers<[1], [0], [0], [1], [0, 0, 1, 1], [], []>} : vector<16x100xf32>, vector<100x166xf32>, vector<16x166xf32> -> vector<16x166xf32>
    %44 = arith.addf %43, %11 : vector<16x166xf32>
    %45 = vector.broadcast %13 : vector<1x166xf32> to vector<16x166xf32>
    %46 = arith.mulf %44, %45 : vector<16x166xf32>
    %cst_36 = arith.constant dense<0.000000e+00> : vector<16xf32>
    %47 = vector.multi_reduction <add>, %46, %cst_36 [1] : vector<16x166xf32> to vector<16xf32>
    %48 = vector.shape_cast %47 : vector<16xf32> to vector<16x1xf32>
    %cst_37 = arith.constant 0.0069444445 : f32
    %49 = vector.broadcast %cst_37 : f32 to vector<16x1xf32>
    %50 = arith.mulf %48, %49 : vector<16x1xf32>
    %51 = vector.broadcast %50 : vector<16x1xf32> to vector<16x166xf32>
    %52 = arith.subf %44, %51 : vector<16x166xf32>
    %53 = vector.broadcast %13 : vector<1x166xf32> to vector<16x166xf32>
    %54 = arith.mulf %52, %53 : vector<16x166xf32>
    %55 = arith.mulf %54, %54 : vector<16x166xf32>
    %cst_38 = arith.constant dense<0.000000e+00> : vector<16xf32>
    %56 = vector.multi_reduction <add>, %55, %cst_38 [1] : vector<16x166xf32> to vector<16xf32>
    %57 = vector.shape_cast %56 : vector<16xf32> to vector<16x1xf32>
    %cst_39 = arith.constant 0.0069444445 : f32
    %58 = vector.broadcast %cst_39 : f32 to vector<16x1xf32>
    %59 = arith.mulf %57, %58 : vector<16x1xf32>
    %60 = vector.broadcast %50 : vector<16x1xf32> to vector<16x166xf32>
    %61 = arith.subf %44, %60 : vector<16x166xf32>
    %cst_40 = arith.constant 0.00999999977 : f32
    %62 = vector.broadcast %cst_40 : f32 to vector<16x1xf32>
    %63 = arith.addf %59, %62 : vector<16x1xf32>
    %64 = math.rsqrt %63 : vector<16x1xf32>
    %65 = vector.broadcast %64 : vector<16x1xf32> to vector<16x166xf32>
    %66 = arith.mulf %61, %65 : vector<16x166xf32>
    %67 = arith.addf %40, %66 : vector<16x166xf32>
    %cst_41 = arith.constant 0.000000e+00 : f32
    %68 = vector.broadcast %cst_41 : f32 to vector<16x166xf32>
    %69 = arith.maximumf %67, %68 : vector<16x166xf32>
    %70 = vector.extract_strided_slice %69 {offsets = [0, 0], sizes = [1, 166], strides = [1, 1]} : vector<16x166xf32> to vector<1x166xf32>
    %c0_42 = arith.constant 0 : index
    %c0_43 = arith.constant 0 : index
    %71 = vector.load %arg13[%c0_42, %c0_43] : memref<2x1992xf32, #tpu.memory_space<vmem>>, vector<1x166xf32>
    tpu.vector_store %arg13[%c0_42, %c0_43], %70 {strides = array<i32>} : memref<2x1992xf32, #tpu.memory_space<vmem>>, vector<1x166xf32>,
    %72 = vector.extract_strided_slice %69 {offsets = [1, 0], sizes = [1, 166], strides = [1, 1]} : vector<16x166xf32> to vector<1x166xf32>
    %c0_44 = arith.constant 0 : index
    %c166 = arith.constant 166 : index
    %73 = vector.load %arg13[%c0_44, %c166] : memref<2x1992xf32, #tpu.memory_space<vmem>>, vector<1x166xf32>
    tpu.vector_store %arg13[%c0_44, %c166], %72 {strides = array<i32>} : memref<2x1992xf32, #tpu.memory_space<vmem>>, vector<1x166xf32>,
    %74 = vector.extract_strided_slice %69 {offsets = [2, 0], sizes = [1, 166], strides = [1, 1]} : vector<16x166xf32> to vector<1x166xf32>
    %c0_45 = arith.constant 0 : index
    %c332 = arith.constant 332 : index
    %75 = vector.load %arg13[%c0_45, %c332] : memref<2x1992xf32, #tpu.memory_space<vmem>>, vector<1x166xf32>
    tpu.vector_store %arg13[%c0_45, %c332], %74 {strides = array<i32>} : memref<2x1992xf32, #tpu.memory_space<vmem>>, vector<1x166xf32>,
    %76 = vector.extract_strided_slice %69 {offsets = [3, 0], sizes = [1, 166], strides = [1, 1]} : vector<16x166xf32> to vector<1x166xf32>
    %c0_46 = arith.constant 0 : index
    %c498 = arith.constant 498 : index
    %77 = vector.load %arg13[%c0_46, %c498] : memref<2x1992xf32, #tpu.memory_space<vmem>>, vector<1x166xf32>
    tpu.vector_store %arg13[%c0_46, %c498], %76 {strides = array<i32>} : memref<2x1992xf32, #tpu.memory_space<vmem>>, vector<1x166xf32>,
    %78 = vector.extract_strided_slice %69 {offsets = [4, 0], sizes = [1, 166], strides = [1, 1]} : vector<16x166xf32> to vector<1x166xf32>
    %c0_47 = arith.constant 0 : index
    %c664 = arith.constant 664 : index
    %79 = vector.load %arg13[%c0_47, %c664] : memref<2x1992xf32, #tpu.memory_space<vmem>>, vector<1x166xf32>
    tpu.vector_store %arg13[%c0_47, %c664], %78 {strides = array<i32>} : memref<2x1992xf32, #tpu.memory_space<vmem>>, vector<1x166xf32>,
    %80 = vector.extract_strided_slice %69 {offsets = [5, 0], sizes = [1, 166], strides = [1, 1]} : vector<16x166xf32> to vector<1x166xf32>
    %c0_48 = arith.constant 0 : index
    %c830 = arith.constant 830 : index
    %81 = vector.load %arg13[%c0_48, %c830] : memref<2x1992xf32, #tpu.memory_space<vmem>>, vector<1x166xf32>
    tpu.vector_store %arg13[%c0_48, %c830], %80 {strides = array<i32>} : memref<2x1992xf32, #tpu.memory_space<vmem>>, vector<1x166xf32>,
    %82 = vector.extract_strided_slice %69 {offsets = [6, 0], sizes = [1, 166], strides = [1, 1]} : vector<16x166xf32> to vector<1x166xf32>
    %c0_49 = arith.constant 0 : index
    %c996 = arith.constant 996 : index
    %83 = vector.load %arg13[%c0_49, %c996] : memref<2x1992xf32, #tpu.memory_space<vmem>>, vector<1x166xf32>
    tpu.vector_store %arg13[%c0_49, %c996], %82 {strides = array<i32>} : memref<2x1992xf32, #tpu.memory_space<vmem>>, vector<1x166xf32>,
    %84 = vector.extract_strided_slice %69 {offsets = [7, 0], sizes = [1, 166], strides = [1, 1]} : vector<16x166xf32> to vector<1x166xf32>
    %c0_50 = arith.constant 0 : index
    %c1162 = arith.constant 1162 : index
    %85 = vector.load %arg13[%c0_50, %c1162] : memref<2x1992xf32, #tpu.memory_space<vmem>>, vector<1x166xf32>
    tpu.vector_store %arg13[%c0_50, %c1162], %84 {strides = array<i32>} : memref<2x1992xf32, #tpu.memory_space<vmem>>, vector<1x166xf32>,
    %86 = vector.extract_strided_slice %69 {offsets = [8, 0], sizes = [1, 166], strides = [1, 1]} : vector<16x166xf32> to vector<1x166xf32>
    %c0_51 = arith.constant 0 : index
    %c1328 = arith.constant 1328 : index
    %87 = vector.load %arg13[%c0_51, %c1328] : memref<2x1992xf32, #tpu.memory_space<vmem>>, vector<1x166xf32>
    tpu.vector_store %arg13[%c0_51, %c1328], %86 {strides = array<i32>} : memref<2x1992xf32, #tpu.memory_space<vmem>>, vector<1x166xf32>,
    %88 = vector.extract_strided_slice %69 {offsets = [9, 0], sizes = [1, 166], strides = [1, 1]} : vector<16x166xf32> to vector<1x166xf32>
    %c0_52 = arith.constant 0 : index
    %c1494 = arith.constant 1494 : index
    %89 = vector.load %arg13[%c0_52, %c1494] : memref<2x1992xf32, #tpu.memory_space<vmem>>, vector<1x166xf32>
    tpu.vector_store %arg13[%c0_52, %c1494], %88 {strides = array<i32>} : memref<2x1992xf32, #tpu.memory_space<vmem>>, vector<1x166xf32>,
    %90 = vector.extract_strided_slice %69 {offsets = [10, 0], sizes = [1, 166], strides = [1, 1]} : vector<16x166xf32> to vector<1x166xf32>
    %c0_53 = arith.constant 0 : index
    %c1660 = arith.constant 1660 : index
    %91 = vector.load %arg13[%c0_53, %c1660] : memref<2x1992xf32, #tpu.memory_space<vmem>>, vector<1x166xf32>
    tpu.vector_store %arg13[%c0_53, %c1660], %90 {strides = array<i32>} : memref<2x1992xf32, #tpu.memory_space<vmem>>, vector<1x166xf32>,
    %92 = vector.extract_strided_slice %69 {offsets = [11, 0], sizes = [1, 166], strides = [1, 1]} : vector<16x166xf32> to vector<1x166xf32>
    %c0_54 = arith.constant 0 : index
    %c1826 = arith.constant 1826 : index
    %93 = vector.load %arg13[%c0_54, %c1826] : memref<2x1992xf32, #tpu.memory_space<vmem>>, vector<1x166xf32>
    tpu.vector_store %arg13[%c0_54, %c1826], %92 {strides = array<i32>} : memref<2x1992xf32, #tpu.memory_space<vmem>>, vector<1x166xf32>,
    %c1 = arith.constant 1 : index
    %c0_55 = arith.constant 0 : index
    %c0_56 = arith.constant 0 : index
    %94 = vector.load %arg0[%c1, %c0_55, %c0_56] : memref<2x36x196xf32, #tpu.memory_space<vmem>>, vector<1x36x196xf32>
    %95 = vector.shape_cast %94 : vector<1x36x196xf32> to vector<36x196xf32>
    %cst_57 = arith.constant dense<0.000000e+00> : vector<16x196xf32>
    %96 = tpu.matmul %0, %95, %cst_57 {dimension_numbers = #tpu.dot_dimension_numbers<[1], [0], [0], [1], [0, 0, 1, 1], [], []>} : vector<16x36xf32>, vector<36x196xf32>, vector<16x196xf32> -> vector<16x196xf32>
    %97 = arith.addf %96, %5 : vector<16x196xf32>
    %cst_58 = arith.constant 0.000000e+00 : f32
    %98 = vector.broadcast %cst_58 : f32 to vector<16x196xf32>
    %99 = arith.maximumf %97, %98 : vector<16x196xf32>
    %100 = vector.extract_strided_slice %99 {offsets = [0, 0], sizes = [16, 166], strides = [1, 1]} : vector<16x196xf32> to vector<16x166xf32>
    %c0_59 = arith.constant 0 : index
    %c0_60 = arith.constant 0 : index
    %101 = vector.load %arg12[%c0_59, %c0_60] : memref<144x166xf32, #tpu.memory_space<vmem>>, vector<16x166xf32>
    tpu.vector_store %arg12[%c0_59, %c0_60], %100 {strides = array<i32>} : memref<144x166xf32, #tpu.memory_space<vmem>>, vector<16x166xf32>,
    %102 = vector.extract_strided_slice %99 {offsets = [0, 1], sizes = [16, 166], strides = [1, 1]} : vector<16x196xf32> to vector<16x166xf32>
    %c16_61 = arith.constant 16 : index
    %c0_62 = arith.constant 0 : index
    %103 = vector.load %arg12[%c16_61, %c0_62] : memref<144x166xf32, #tpu.memory_space<vmem>>, vector<16x166xf32>
    tpu.vector_store %arg12[%c16_61, %c0_62], %102 {strides = array<i32>} : memref<144x166xf32, #tpu.memory_space<vmem>>, vector<16x166xf32>,
    %104 = vector.extract_strided_slice %99 {offsets = [0, 2], sizes = [16, 166], strides = [1, 1]} : vector<16x196xf32> to vector<16x166xf32>
    %c32_63 = arith.constant 32 : index
    %c0_64 = arith.constant 0 : index
    %105 = vector.load %arg12[%c32_63, %c0_64] : memref<144x166xf32, #tpu.memory_space<vmem>>, vector<16x166xf32>
    tpu.vector_store %arg12[%c32_63, %c0_64], %104 {strides = array<i32>} : memref<144x166xf32, #tpu.memory_space<vmem>>, vector<16x166xf32>,
    %106 = vector.extract_strided_slice %99 {offsets = [0, 14], sizes = [16, 166], strides = [1, 1]} : vector<16x196xf32> to vector<16x166xf32>
    %c48_65 = arith.constant 48 : index
    %c0_66 = arith.constant 0 : index
    %107 = vector.load %arg12[%c48_65, %c0_66] : memref<144x166xf32, #tpu.memory_space<vmem>>, vector<16x166xf32>
    tpu.vector_store %arg12[%c48_65, %c0_66], %106 {strides = array<i32>} : memref<144x166xf32, #tpu.memory_space<vmem>>, vector<16x166xf32>,
    %108 = vector.extract_strided_slice %99 {offsets = [0, 15], sizes = [16, 166], strides = [1, 1]} : vector<16x196xf32> to vector<16x166xf32>
    %c64_67 = arith.constant 64 : index
    %c0_68 = arith.constant 0 : index
    %109 = vector.load %arg12[%c64_67, %c0_68] : memref<144x166xf32, #tpu.memory_space<vmem>>, vector<16x166xf32>
    tpu.vector_store %arg12[%c64_67, %c0_68], %108 {strides = array<i32>} : memref<144x166xf32, #tpu.memory_space<vmem>>, vector<16x166xf32>,
    %110 = vector.extract_strided_slice %99 {offsets = [0, 16], sizes = [16, 166], strides = [1, 1]} : vector<16x196xf32> to vector<16x166xf32>
    %c80_69 = arith.constant 80 : index
    %c0_70 = arith.constant 0 : index
    %111 = vector.load %arg12[%c80_69, %c0_70] : memref<144x166xf32, #tpu.memory_space<vmem>>, vector<16x166xf32>
    tpu.vector_store %arg12[%c80_69, %c0_70], %110 {strides = array<i32>} : memref<144x166xf32, #tpu.memory_space<vmem>>, vector<16x166xf32>,
    %112 = vector.extract_strided_slice %99 {offsets = [0, 28], sizes = [16, 166], strides = [1, 1]} : vector<16x196xf32> to vector<16x166xf32>
    %c96_71 = arith.constant 96 : index
    %c0_72 = arith.constant 0 : index
    %113 = vector.load %arg12[%c96_71, %c0_72] : memref<144x166xf32, #tpu.memory_space<vmem>>, vector<16x166xf32>
    tpu.vector_store %arg12[%c96_71, %c0_72], %112 {strides = array<i32>} : memref<144x166xf32, #tpu.memory_space<vmem>>, vector<16x166xf32>,
    %114 = vector.extract_strided_slice %99 {offsets = [0, 29], sizes = [16, 166], strides = [1, 1]} : vector<16x196xf32> to vector<16x166xf32>
    %c112_73 = arith.constant 112 : index
    %c0_74 = arith.constant 0 : index
    %115 = vector.load %arg12[%c112_73, %c0_74] : memref<144x166xf32, #tpu.memory_space<vmem>>, vector<16x166xf32>
    tpu.vector_store %arg12[%c112_73, %c0_74], %114 {strides = array<i32>} : memref<144x166xf32, #tpu.memory_space<vmem>>, vector<16x166xf32>,
    %116 = vector.extract_strided_slice %99 {offsets = [0, 30], sizes = [16, 166], strides = [1, 1]} : vector<16x196xf32> to vector<16x166xf32>
    %c128_75 = arith.constant 128 : index
    %c0_76 = arith.constant 0 : index
    %117 = vector.load %arg12[%c128_75, %c0_76] : memref<144x166xf32, #tpu.memory_space<vmem>>, vector<16x166xf32>
    tpu.vector_store %arg12[%c128_75, %c0_76], %116 {strides = array<i32>} : memref<144x166xf32, #tpu.memory_space<vmem>>, vector<16x166xf32>,
    %c0_77 = arith.constant 0 : index
    %c0_78 = arith.constant 0 : index
    %118 = vector.load %arg12[%c0_77, %c0_78] : memref<144x166xf32, #tpu.memory_space<vmem>>, vector<144x166xf32>
    %cst_79 = arith.constant dense<0.000000e+00> : vector<16x166xf32>
    %119 = tpu.matmul %1, %118, %cst_79 {dimension_numbers = #tpu.dot_dimension_numbers<[1], [0], [0], [1], [0, 0, 1, 1], [], []>} : vector<16x144xf32>, vector<144x166xf32>, vector<16x166xf32> -> vector<16x166xf32>
    %120 = arith.addf %119, %8 : vector<16x166xf32>
    %c1_80 = arith.constant 1 : index
    %c0_81 = arith.constant 0 : index
    %c0_82 = arith.constant 0 : index
    %121 = vector.load %arg1[%c1_80, %c0_81, %c0_82] : memref<2x100x166xf32, #tpu.memory_space<vmem>>, vector<1x100x166xf32>
    %122 = vector.shape_cast %121 : vector<1x100x166xf32> to vector<100x166xf32>
    %cst_83 = arith.constant dense<0.000000e+00> : vector<16x166xf32>
    %123 = tpu.matmul %2, %122, %cst_83 {dimension_numbers = #tpu.dot_dimension_numbers<[1], [0], [0], [1], [0, 0, 1, 1], [], []>} : vector<16x100xf32>, vector<100x166xf32>, vector<16x166xf32> -> vector<16x166xf32>
    %124 = arith.addf %123, %11 : vector<16x166xf32>
    %125 = vector.broadcast %13 : vector<1x166xf32> to vector<16x166xf32>
    %126 = arith.mulf %124, %125 : vector<16x166xf32>
    %cst_84 = arith.constant dense<0.000000e+00> : vector<16xf32>
    %127 = vector.multi_reduction <add>, %126, %cst_84 [1] : vector<16x166xf32> to vector<16xf32>
    %128 = vector.shape_cast %127 : vector<16xf32> to vector<16x1xf32>
    %cst_85 = arith.constant 0.0069444445 : f32
    %129 = vector.broadcast %cst_85 : f32 to vector<16x1xf32>
    %130 = arith.mulf %128, %129 : vector<16x1xf32>
    %131 = vector.broadcast %130 : vector<16x1xf32> to vector<16x166xf32>
    %132 = arith.subf %124, %131 : vector<16x166xf32>
    %133 = vector.broadcast %13 : vector<1x166xf32> to vector<16x166xf32>
    %134 = arith.mulf %132, %133 : vector<16x166xf32>
    %135 = arith.mulf %134, %134 : vector<16x166xf32>
    %cst_86 = arith.constant dense<0.000000e+00> : vector<16xf32>
    %136 = vector.multi_reduction <add>, %135, %cst_86 [1] : vector<16x166xf32> to vector<16xf32>
    %137 = vector.shape_cast %136 : vector<16xf32> to vector<16x1xf32>
    %cst_87 = arith.constant 0.0069444445 : f32
    %138 = vector.broadcast %cst_87 : f32 to vector<16x1xf32>
    %139 = arith.mulf %137, %138 : vector<16x1xf32>
    %140 = vector.broadcast %130 : vector<16x1xf32> to vector<16x166xf32>
    %141 = arith.subf %124, %140 : vector<16x166xf32>
    %cst_88 = arith.constant 0.00999999977 : f32
    %142 = vector.broadcast %cst_88 : f32 to vector<16x1xf32>
    %143 = arith.addf %139, %142 : vector<16x1xf32>
    %144 = math.rsqrt %143 : vector<16x1xf32>
    %145 = vector.broadcast %144 : vector<16x1xf32> to vector<16x166xf32>
    %146 = arith.mulf %141, %145 : vector<16x166xf32>
    %147 = arith.addf %120, %146 : vector<16x166xf32>
    %cst_89 = arith.constant 0.000000e+00 : f32
    %148 = vector.broadcast %cst_89 : f32 to vector<16x166xf32>
    %149 = arith.maximumf %147, %148 : vector<16x166xf32>
    %150 = vector.extract_strided_slice %149 {offsets = [0, 0], sizes = [1, 166], strides = [1, 1]} : vector<16x166xf32> to vector<1x166xf32>
    %c1_90 = arith.constant 1 : index
    %c0_91 = arith.constant 0 : index
    %151 = vector.load %arg13[%c1_90, %c0_91] : memref<2x1992xf32, #tpu.memory_space<vmem>>, vector<1x166xf32>
    tpu.vector_store %arg13[%c1_90, %c0_91], %150 {strides = array<i32>} : memref<2x1992xf32, #tpu.memory_space<vmem>>, vector<1x166xf32>,
    %152 = vector.extract_strided_slice %149 {offsets = [1, 0], sizes = [1, 166], strides = [1, 1]} : vector<16x166xf32> to vector<1x166xf32>
    %c1_92 = arith.constant 1 : index
    %c166_93 = arith.constant 166 : index
    %153 = vector.load %arg13[%c1_92, %c166_93] : memref<2x1992xf32, #tpu.memory_space<vmem>>, vector<1x166xf32>
    tpu.vector_store %arg13[%c1_92, %c166_93], %152 {strides = array<i32>} : memref<2x1992xf32, #tpu.memory_space<vmem>>, vector<1x166xf32>,
    %154 = vector.extract_strided_slice %149 {offsets = [2, 0], sizes = [1, 166], strides = [1, 1]} : vector<16x166xf32> to vector<1x166xf32>
    %c1_94 = arith.constant 1 : index
    %c332_95 = arith.constant 332 : index
    %155 = vector.load %arg13[%c1_94, %c332_95] : memref<2x1992xf32, #tpu.memory_space<vmem>>, vector<1x166xf32>
    tpu.vector_store %arg13[%c1_94, %c332_95], %154 {strides = array<i32>} : memref<2x1992xf32, #tpu.memory_space<vmem>>, vector<1x166xf32>,
    %156 = vector.extract_strided_slice %149 {offsets = [3, 0], sizes = [1, 166], strides = [1, 1]} : vector<16x166xf32> to vector<1x166xf32>
    %c1_96 = arith.constant 1 : index
    %c498_97 = arith.constant 498 : index
    %157 = vector.load %arg13[%c1_96, %c498_97] : memref<2x1992xf32, #tpu.memory_space<vmem>>, vector<1x166xf32>
    tpu.vector_store %arg13[%c1_96, %c498_97], %156 {strides = array<i32>} : memref<2x1992xf32, #tpu.memory_space<vmem>>, vector<1x166xf32>,
    %158 = vector.extract_strided_slice %149 {offsets = [4, 0], sizes = [1, 166], strides = [1, 1]} : vector<16x166xf32> to vector<1x166xf32>
    %c1_98 = arith.constant 1 : index
    %c664_99 = arith.constant 664 : index
    %159 = vector.load %arg13[%c1_98, %c664_99] : memref<2x1992xf32, #tpu.memory_space<vmem>>, vector<1x166xf32>
    tpu.vector_store %arg13[%c1_98, %c664_99], %158 {strides = array<i32>} : memref<2x1992xf32, #tpu.memory_space<vmem>>, vector<1x166xf32>,
    %160 = vector.extract_strided_slice %149 {offsets = [5, 0], sizes = [1, 166], strides = [1, 1]} : vector<16x166xf32> to vector<1x166xf32>
    %c1_100 = arith.constant 1 : index
    %c830_101 = arith.constant 830 : index
    %161 = vector.load %arg13[%c1_100, %c830_101] : memref<2x1992xf32, #tpu.memory_space<vmem>>, vector<1x166xf32>
    tpu.vector_store %arg13[%c1_100, %c830_101], %160 {strides = array<i32>} : memref<2x1992xf32, #tpu.memory_space<vmem>>, vector<1x166xf32>,
    %162 = vector.extract_strided_slice %149 {offsets = [6, 0], sizes = [1, 166], strides = [1, 1]} : vector<16x166xf32> to vector<1x166xf32>
    %c1_102 = arith.constant 1 : index
    %c996_103 = arith.constant 996 : index
    %163 = vector.load %arg13[%c1_102, %c996_103] : memref<2x1992xf32, #tpu.memory_space<vmem>>, vector<1x166xf32>
    tpu.vector_store %arg13[%c1_102, %c996_103], %162 {strides = array<i32>} : memref<2x1992xf32, #tpu.memory_space<vmem>>, vector<1x166xf32>,
    %164 = vector.extract_strided_slice %149 {offsets = [7, 0], sizes = [1, 166], strides = [1, 1]} : vector<16x166xf32> to vector<1x166xf32>
    %c1_104 = arith.constant 1 : index
    %c1162_105 = arith.constant 1162 : index
    %165 = vector.load %arg13[%c1_104, %c1162_105] : memref<2x1992xf32, #tpu.memory_space<vmem>>, vector<1x166xf32>
    tpu.vector_store %arg13[%c1_104, %c1162_105], %164 {strides = array<i32>} : memref<2x1992xf32, #tpu.memory_space<vmem>>, vector<1x166xf32>,
    %166 = vector.extract_strided_slice %149 {offsets = [8, 0], sizes = [1, 166], strides = [1, 1]} : vector<16x166xf32> to vector<1x166xf32>
    %c1_106 = arith.constant 1 : index
    %c1328_107 = arith.constant 1328 : index
    %167 = vector.load %arg13[%c1_106, %c1328_107] : memref<2x1992xf32, #tpu.memory_space<vmem>>, vector<1x166xf32>
    tpu.vector_store %arg13[%c1_106, %c1328_107], %166 {strides = array<i32>} : memref<2x1992xf32, #tpu.memory_space<vmem>>, vector<1x166xf32>,
    %168 = vector.extract_strided_slice %149 {offsets = [9, 0], sizes = [1, 166], strides = [1, 1]} : vector<16x166xf32> to vector<1x166xf32>
    %c1_108 = arith.constant 1 : index
    %c1494_109 = arith.constant 1494 : index
    %169 = vector.load %arg13[%c1_108, %c1494_109] : memref<2x1992xf32, #tpu.memory_space<vmem>>, vector<1x166xf32>
    tpu.vector_store %arg13[%c1_108, %c1494_109], %168 {strides = array<i32>} : memref<2x1992xf32, #tpu.memory_space<vmem>>, vector<1x166xf32>,
    %170 = vector.extract_strided_slice %149 {offsets = [10, 0], sizes = [1, 166], strides = [1, 1]} : vector<16x166xf32> to vector<1x166xf32>
    %c1_110 = arith.constant 1 : index
    %c1660_111 = arith.constant 1660 : index
    %171 = vector.load %arg13[%c1_110, %c1660_111] : memref<2x1992xf32, #tpu.memory_space<vmem>>, vector<1x166xf32>
    tpu.vector_store %arg13[%c1_110, %c1660_111], %170 {strides = array<i32>} : memref<2x1992xf32, #tpu.memory_space<vmem>>, vector<1x166xf32>,
    %172 = vector.extract_strided_slice %149 {offsets = [11, 0], sizes = [1, 166], strides = [1, 1]} : vector<16x166xf32> to vector<1x166xf32>
    %c1_112 = arith.constant 1 : index
    %c1826_113 = arith.constant 1826 : index
    %173 = vector.load %arg13[%c1_112, %c1826_113] : memref<2x1992xf32, #tpu.memory_space<vmem>>, vector<1x166xf32>
    tpu.vector_store %arg13[%c1_112, %c1826_113], %172 {strides = array<i32>} : memref<2x1992xf32, #tpu.memory_space<vmem>>, vector<1x166xf32>,
    %c0_114 = arith.constant 0 : index
    %c0_115 = arith.constant 0 : index
    %174 = vector.load %arg13[%c0_114, %c0_115] : memref<2x1992xf32, #tpu.memory_space<vmem>>, vector<2x1992xf32>
    %c0_116 = arith.constant 0 : index
    %c0_117 = arith.constant 0 : index
    %175 = vector.load %arg8[%c0_116, %c0_117] : memref<1992x128xf32, #tpu.memory_space<vmem>>, vector<1992x128xf32>
    %cst_118 = arith.constant dense<0.000000e+00> : vector<2x128xf32>
    %176 = tpu.matmul %174, %175, %cst_118 {dimension_numbers = #tpu.dot_dimension_numbers<[1], [0], [0], [1], [0, 0, 1, 1], [], []>} : vector<2x1992xf32>, vector<1992x128xf32>, vector<2x128xf32> -> vector<2x128xf32>
    %177 = vector.broadcast %12 : vector<1x128xf32> to vector<2x128xf32>
    %178 = arith.addf %176, %177 : vector<2x128xf32>
    %c0_119 = arith.constant 0 : index
    %c0_120 = arith.constant 0 : index
    %179 = vector.load %arg11[%c0_119, %c0_120] : memref<2x128xf32, #tpu.memory_space<vmem>>, vector<2x128xf32>
    tpu.vector_store %arg11[%c0_119, %c0_120], %178 {strides = array<i32>} : memref<2x128xf32, #tpu.memory_space<vmem>>, vector<2x128xf32>,
    return
  }
}

</mosaic_0001>

<bundles_post_ra>
// kernel: residual_block_low_forward.1
= control target key start
LH: loop header
LB: loop body
LE: loop exit
PB: predicated region body
PF: predicated region fallthrough
CT: control target
= control target key end

     0   :  { %v3219_v7 = vmov 0.0   ;;  %v3220_v12 = vmov 0   ;;  %vm102_vm0 = vcmask 1043456   ;;  %vm95_vm1 = vcmask 293888   ;;  %s5126_s0 = inlined_call_operand.vmem [shape: f32[2,36,196], index: 0, kind: input, shape index: {}]   ;;  %s5127_s1 = inlined_call_operand.vmem [shape: f32[2,100,166], index: 1, kind: input, shape index: {}]   ;;  %s5128_s2 = inlined_call_operand.vmem [shape: f32[16,36], index: 2, kind: input, shape index: {}]   ;;  %s5129_s3 = inlined_call_operand.vmem [shape: f32[16,1], index: 3, kind: input, shape index: {}]   ;;  %s5130_s4 = inlined_call_operand.vmem [shape: f32[16,144], index: 4, kind: input, shape index: {}]   ;;  %s5131_s5 = inlined_call_operand.vmem [shape: f32[16,1], index: 5, kind: input, shape index: {}]   ;;  %s5132_s6 = inlined_call_operand.vmem [shape: f32[16,100], index: 6, kind: input, shape index: {}]   ;;  %s5133_s7 = inlined_call_operand.vmem [shape: f32[16,1], index: 7, kind: input, shape index: {}]   ;;  %s5134_s8 = inlined_call_operand.vmem [shape: f32[1992,128], index: 8, kind: input, shape index: {}]   ;;  %s5135_s9 = inlined_call_operand.vmem [shape: f32[1,128], index: 9, kind: input, shape index: {}]   ;;  %s5136_s10 = inlined_call_operand.vmem [shape: f32[1,166], index: 10, kind: input, shape index: {}]   ;;  %s5137_s11 = inlined_call_operand.hbm [shape: f32[2,128], index: 11, kind: output, shape index: {}]  }
   0x1   :  { %v86_v0 = vld [vmem:[%s5126_s0 + $0x8] sm:$0xff]  ;;  %v88_v1 = vld [vmem:[%s5126_s0 + $0x18] sm:$0xff]  ;;  %v85_v2 = vld [vmem:[%s5126_s0] sm:$0xff]  ;;  %173 = vmatprep.mubr.f32.mxu0 %v3219_v7  ;;  %3182 = vset.pattern.permute.xlu0 %v3220_v12 }
   0x2   :  { %v2763_v3 = vpack.c.bf16 %v88_v1, %v86_v0  ;;  %v87_v4 = vld [vmem:[%s5126_s0 + $0x10] sm:$0xff]  ;;  %v90_v5 = vld [vmem:[%s5126_s0 + $0x28] sm:$0xff]  ;;  %v92_v6 = vld [vmem:[%s5126_s0 + $0x38] sm:$0xff]  ;;  %3183 = vset.pattern.permute.xlu1 %v3220_v12 }
   0x3   :  { %v2765_v8 = vpack.c.bf16 %v87_v4, %v85_v2  ;;  %v2767_v9 = vpack.c.bf16 %v92_v6, %v90_v5  ;;  %v89_v10 = vld [vmem:[%s5126_s0 + $0x20] sm:$0xff]  ;;  %v91_v11 = vld [vmem:[%s5126_s0 + $0x30] sm:$0xff]  ;;  %v94_v14 = vld [vmem:[%s5126_s0 + $0x48] sm:$0xf] }
   0x4   :  { %2764 = vmatprep.subr.bf16.mxu0 %v2763_v3  ;;  %v2769_v13 = vpack.c.bf16 %v91_v11, %v89_v10  ;;  %v472_v15 = vld [vmem:[%s5127_s1 + $0x8] sm:$0xff]  ;;  %v474_v16 = vld [vmem:[%s5127_s1 + $0x18] sm:$0xff]  ;;  %v471_v17 = vld [vmem:[%s5127_s1] sm:$0xff] }
   0x5   :  { %2766 = vmatpush1.bf16.msra.mxu0 %v2765_v8  ;;  %v473_v18 = vld [vmem:[%s5127_s1 + $0x10] sm:$0xff]  ;;  %v476_v19 = vld [vmem:[%s5127_s1 + $0x28] sm:$0xff]  ;;  %v478_v20 = vld [vmem:[%s5127_s1 + $0x38] sm:$0xff]  ;;  %v2807_v22 = vpack.c.bf16 %v474_v16, %v472_v15 }
   0x6   :  { %2768 = vmatprep.subr.bf16.mxu0 %v2767_v9  ;;  %v93_v21 = vld [vmem:[%s5126_s0 + $0x40] sm:$0xf]  ;;  %v2809_v24 = vpack.c.bf16 %v473_v18, %v471_v17  ;;  %v2811_v25 = vpack.c.bf16 %v478_v20, %v476_v19  ;;  %v477_v27 = vld [vmem:[%s5127_s1 + $0x30] sm:$0xff]  ;;  %v480_v28 = vld [vmem:[%s5127_s1 + $0x48] sm:$0xff] }
   0x7   :  { %v3355_v23 = vld [vmem:[%s5128_s2] sm:$0xff]  ;;  %v482_v29 = vld [vmem:[%s5127_s1 + $0x58] sm:$0xff]  ;;  %v3376_v30 = vld [vmem:[%s5128_s2 + $0x8] sm:$0xff] }
   0x8   :  { %v475_v26 = vld [vmem:[%s5127_s1 + $0x20] sm:$0xff]  ;;  %v2815_v32 = vpack.c.bf16 %v482_v29, %v480_v28  ;;  %v481_v34 = vld [vmem:[%s5127_s1 + $0x50] sm:$0xff]  ;;  %v484_v35 = vld [vmem:[%s5127_s1 + $0x68] sm:$0xff] }
   0x9   :  { %2770 = vmatpush1.bf16.msra.mxu0 %v2769_v13  ;;  %v2813_v31 = vpack.c.bf16 %v477_v27, %v475_v26  ;;  %v479_v33 = vld [vmem:[%s5127_s1 + $0x40] sm:$0xff]  ;;  %v486_v36 = vld [vmem:[%s5127_s1 + $0x78] sm:$0xff] }
   0xa   :  { %2460 = vmatprep.subr.msk.mxu0 %vm102_vm0, %v94_v14  ;;  %v47_v37 = vld [vmem:[%s5129_s3] sm:$0xff] }
   0xb   :  { %51 = vperm.xlu0 %3182, %v47_v37  }
   0xd   :  { %2461 = vmatpush1.msk.msra.mxu0 %vm102_vm0, %v93_v21 }
   0xe   :  { %2462 = vmatmul.mubr.msk.f32.vlgmr.msra.gmra.mrb[0].mxu0 %vm95_vm1, %v3355_v23  ;;  %2808 = vmatprep.subr.bf16.mxu0 %v2807_v22 }
   0xf   :  { %2810 = vmatpush1.bf16.msra.mxu0 %v2809_v24  ;;  %179 = vmatprep.mubr.f32.mxu0 %v3219_v7 }
  0x10   :  { %2812 = vmatprep.subr.bf16.mxu0 %v2811_v25 }
  0x12   :  { %2463 = vmatmul.mubr.msk.f32.gmra.mrb[2].mxu0 %vm95_vm1, %v3376_v30 }
  0x13   :  { %16 = vsyncpa [#allocation5], 0  ;;  %2814 = vmatpush1.bf16.msra.mxu0 %v2813_v31  ;;  %v2817_v38 = vpack.c.bf16 %v481_v34, %v479_v33  ;;  %573 = vmatprep.mubr.f32.mxu0 %v3219_v7  ;;  %v48_v39 = vld [vmem:[%s5129_s3 + $0x8] sm:$0xff]  ;;  %v2819_v40 = vpack.c.bf16 %v486_v36, %v484_v35  ;;  %v483_v41 = vld [vmem:[%s5127_s1 + $0x60] sm:$0xff]  ;;  %vm5138_vm2 = vcmask 818176   ;;  %vm191_vm3 = vcmask 310272  }
  0x14   :  { %2816 = vmatprep.subr.bf16.mxu0 %v2815_v32  ;;  %v485_v42 = vld [vmem:[%s5127_s1 + $0x70] sm:$0xff]  ;;  %v488_v43 = vld [vmem:[%s5127_s1 + $0x88] sm:$0xff]  ;;  %v490_v44 = vld [vmem:[%s5127_s1 + $0x98] sm:$0xff]  ;;  %56 = vperm.xlu0 %3182, %v48_v39   ;;  %s3222_s24 = smov 127   ;;  %s3223_s25 = smov 114   ;;  %vm387_vm4 = vcmask 130048  }
  0x15   :  { %v2821_v45 = vpack.c.bf16 %v485_v42, %v483_v41  ;;  %v2823_v46 = vpack.c.bf16 %v490_v44, %v488_v43  ;;  %v487_v47 = vld [vmem:[%s5127_s1 + $0x80] sm:$0xff]  ;;  %v489_v48 = vld [vmem:[%s5127_s1 + $0x90] sm:$0xff]  ;;  %v492_v49 = vld [vmem:[%s5127_s1 + $0xa8] sm:$0xff]  ;;  %s3224_s26 = smov 113   ;;  %s3225_s27 = smov 112   ;;  %vm207_vm5 = vcmask 1039360  }
  0x16   :  { %v494_v50 = vld [vmem:[%s5127_s1 + $0xb8] sm:$0xff]  ;;  %v2825_v51 = vpack.c.bf16 %v489_v48, %v487_v47  ;;  %v491_v53 = vld [vmem:[%s5127_s1 + $0xa0] sm:$0xff]  ;;  %v493_v54 = vld [vmem:[%s5127_s1 + $0xb0] sm:$0xff]  ;;  %s3226_s28 = smov 100   ;;  %s3227_s29 = smov 99   ;;  %vm226_vm6 = vcmask 1031168  }
  0x17   :  { %2818 = vmatpush1.bf16.msra.mxu0 %v2817_v38  ;;  %v2827_v52 = vpack.c.bf16 %v494_v50, %v492_v49  ;;  %v2829_v55 = vpack.c.bf16 %v493_v54, %v491_v53  ;;  %v496_v56 = vld [vmem:[%s5127_s1 + $0xc8] sm:$0xf]  ;;  %v2471_v57 = vld [vmem:[%s5126_s0 + $0x58] sm:$0xff]  ;;  %v2470_v59 = vld [vmem:[%s5126_s0 + $0x50] sm:$0xff]  ;;  %s3228_s30 = smov 98   ;;  %vm5141_vm7 = vcmask 932864  }
  0x18   :  { %2820 = vmatprep.subr.bf16.mxu0 %v2819_v40  ;;  %v2473_v58 = vld [vmem:[%s5126_s0 + $0x68] sm:$0xff]  ;;  %v2472_v60 = vld [vmem:[%s5126_s0 + $0x60] sm:$0xff]  ;;  %v2475_v61 = vld [vmem:[%s5126_s0 + $0x78] sm:$0xff]  ;;  %vm264_vm8 = vcmask 924672   ;;  %vm283_vm9 = vcmask 916480   ;;  %vm321_vm10 = vcmask 809984  }
  0x19   :  { %v2477_v62 = vld [vmem:[%s5126_s0 + $0x88] sm:$0xff]  ;;  %v495_v63 = vld [vmem:[%s5127_s1 + $0xc0] sm:$0xf]  ;;  %v2831_v0 = vpack.c.bf16 %v2473_v58, %v2471_v57  ;;  %v2833_v2 = vpack.c.bf16 %v2472_v60, %v2470_v59  ;;  %v2474_v4 = vld [vmem:[%s5126_s0 + $0x70] sm:$0xff]  ;;  %vm340_vm11 = vcmask 801792   ;;  %s3231_s14 = smov 76  }
  0x1a   :  { %v3457_v1 = vld [vmem:[%s5132_s6] sm:$0xff]  ;;  %v2835_v3 = vpack.c.bf16 %v2477_v62, %v2475_v61  ;;  %v3472_v8 = vld [vmem:[%s5132_s6 + $0x8] sm:$0xff]  ;;  %v2479_v9 = vld [vmem:[%s5126_s0 + $0x98] sm:$0xf]  ;;  %s3232_s21 = smov 24   ;;  %s3235_s6 = smov 48  }
  0x1b   :  { %2822 = vmatpush1.bf16.msra.mxu0 %v2821_v45  ;;  %v2476_v5 = vld [vmem:[%s5126_s0 + $0x80] sm:$0xff]  ;;  %v2478_v10 = vld [vmem:[%s5126_s0 + $0x90] sm:$0xf]  ;;  %v2487_v11 = vld [vmem:[%s5127_s1 + $0xd8] sm:$0xff]  ;;  %s3236_s15 = smov 86   ;;  %s3237_s18 = smov 124  }
  0x1c   :  { %2824 = vmatprep.subr.bf16.mxu0 %v2823_v46  ;;  %v2837_v6 = vpack.c.bf16 %v2476_v5, %v2474_v4  ;;  %v2489_v12 = vld [vmem:[%s5127_s1 + $0xe8] sm:$0xff]  ;;  %v2486_v14 = vld [vmem:[%s5127_s1 + $0xd0] sm:$0xff]  ;;  %v2488_v15 = vld [vmem:[%s5127_s1 + $0xe0] sm:$0xff]  ;;  %s3238_s19 = smov 34  }
  0x1d   :  { %v2875_v13 = vpack.c.bf16 %v2489_v12, %v2487_v11  ;;  %v2877_v16 = vpack.c.bf16 %v2488_v15, %v2486_v14  ;;  %v2491_v17 = vld [vmem:[%s5127_s1 + $0xf8] sm:$0xff]  ;;  %v2493_v18 = vld [vmem:[%s5127_s1 + $0x108] sm:$0xff]  ;;  %v2490_v20 = vld [vmem:[%s5127_s1 + $0xf0] sm:$0xff] }
  0x1e   :  { %v2879_v19 = vpack.c.bf16 %v2493_v18, %v2491_v17  ;;  %v2492_v21 = vld [vmem:[%s5127_s1 + $0x100] sm:$0xff]  ;;  %v2497_v24 = vld [vmem:[%s5127_s1 + $0x128] sm:$0xff]  ;;  %v2494_v26 = vld [vmem:[%s5127_s1 + $0x110] sm:$0xff] }
  0x1f   :  { %2826 = vmatpush1.bf16.msra.mxu0 %v2825_v51  ;;  %v2881_v22 = vpack.c.bf16 %v2492_v21, %v2490_v20  ;;  %v2496_v27 = vld [vmem:[%s5127_s1 + $0x120] sm:$0xff]  ;;  %v2499_v29 = vld [vmem:[%s5127_s1 + $0x138] sm:$0xff]  ;;  %v2498_v32 = vld [vmem:[%s5127_s1 + $0x130] sm:$0xff] }
  0x20   :  { %2828 = vmatprep.subr.bf16.mxu0 %v2827_v52  ;;  %v2885_v28 = vpack.c.bf16 %v2496_v27, %v2494_v26  ;;  %v2500_v33 = vld [vmem:[%s5127_s1 + $0x140] sm:$0xff]  ;;  %v2503_v35 = vld [vmem:[%s5127_s1 + $0x158] sm:$0xff]  ;;  %v2505_v36 = vld [vmem:[%s5127_s1 + $0x168] sm:$0xff] }
  0x21   :  { %v2889_v34 = vpack.c.bf16 %v2500_v33, %v2498_v32  ;;  %v2891_v37 = vpack.c.bf16 %v2505_v36, %v2503_v35  ;;  %v2502_v38 = vld [vmem:[%s5127_s1 + $0x150] sm:$0xff]  ;;  %v2504_v39 = vld [vmem:[%s5127_s1 + $0x160] sm:$0xff]  ;;  %v2507_v41 = vld [vmem:[%s5127_s1 + $0x178] sm:$0xff] }
  0x22   :  { %v2893_v40 = vpack.c.bf16 %v2504_v39, %v2502_v38  ;;  %v2509_v42 = vld [vmem:[%s5127_s1 + $0x188] sm:$0xff]  ;;  %v2506_v44 = vld [vmem:[%s5127_s1 + $0x170] sm:$0xff]  ;;  %v2508_v45 = vld [vmem:[%s5127_s1 + $0x180] sm:$0xff] }
  0x23   :  { %2830 = vmatpush1.bf16.msra.mxu0 %v2829_v55  ;;  %v2895_v43 = vpack.c.bf16 %v2509_v42, %v2507_v41  ;;  %v2897_v46 = vpack.c.bf16 %v2508_v45, %v2506_v44  ;;  %v2511_v47 = vld [vmem:[%s5127_s1 + $0x198] sm:$0xf]  ;;  %v2510_v48 = vld [vmem:[%s5127_s1 + $0x190] sm:$0xf]  ;;  %v3634_v20 = vld [vmem:[%s5130_s4 + $0x8] sm:$0xff] }
  0x24   :  { %2466 = vmatprep.subr.msk.mxu0 %vm102_vm0, %v496_v56  ;;  %2464 = vmatprep.mubr.msk.f32.mxu1 %vm387_vm4, %v3634_v20  ;;  %v72_v32 = vld [vmem:[%s5133_s7 + $0x8] sm:$0xff] }
  0x27   :  { %2467 = vmatpush1.msk.msra.mxu0 %vm102_vm0, %v495_v63 }
  0x28   :  { %2832 = vmatprep.subr.bf16.mxu0 %v2831_v0  ;;  %2468 = vmatmul.mubr.msk.f32.vlgmr.msra.gmra.mrb[4].mxu0 %vm5138_vm2, %v3457_v1 }
  0x29   :  { %2834 = vmatpush1.bf16.msra.mxu0 %v2833_v2  ;;  %579 = vmatprep.mubr.f32.mxu0 %v3219_v7 }
  0x2a   :  { %2836 = vmatprep.subr.bf16.mxu0 %v2835_v3 }
  0x2c   :  { %2469 = vmatmul.mubr.msk.f32.gmra.mrb[6].mxu0 %vm5138_vm2, %v3472_v8 }
  0x2d   :  { %2838 = vmatpush1.bf16.msra.mxu0 %v2837_v6  ;;  %933 = vmatprep.mubr.f32.mxu0 %v3219_v7 }
  0x2e   :  { %2480 = vmatprep.subr.msk.mxu0 %vm102_vm0, %v2479_v9 }
  0x31   :  { %2481 = vmatpush1.msk.msra.mxu0 %vm102_vm0, %v2478_v10 }
  0x32   :  { %2482 = vmatmul.mubr.msk.f32.vlgmr.msra.gmra.mrb[8].mxu0 %vm95_vm1, %v3355_v23  ;;  %2876 = vmatprep.subr.bf16.mxu0 %v2875_v13  ;;  %v2495_v23 = vld [vmem:[%s5127_s1 + $0x118] sm:$0xff] }
  0x33   :  { %939 = vmatprep.mubr.f32.mxu0 %v3219_v7  ;;  %2878 = vmatpush1.bf16.msra.mxu0 %v2877_v16  ;;  %v2883_v25 = vpack.c.bf16 %v2497_v24, %v2495_v23 }
  0x34   :  { %2880 = vmatprep.subr.bf16.mxu0 %v2879_v19 }
  0x36   :  { %2483 = vmatmul.mubr.msk.f32.gmra.mrb[10].mxu0 %vm95_vm1, %v3376_v30  ;;  %v2501_v30 = vld [vmem:[%s5127_s1 + $0x148] sm:$0xff]  ;;  %s3221_s1 = smov 126  }
  0x37   :  { %1312 = vmatprep.mubr.f32.mxu0 %v3219_v7  ;;  %2882 = vmatpush1.bf16.msra.mxu0 %v2881_v22  ;;  %v2887_v31 = vpack.c.bf16 %v2501_v30, %v2499_v29 }
  0x38   :  { %2884 = vmatprep.subr.bf16.mxu0 %v2883_v25  ;;  %v71_v25 = vld [vmem:[%s5133_s7] sm:$0xff] }
  0x3b   :  { %2886 = vmatpush1.bf16.msra.mxu0 %v2885_v28 }
  0x3c   :  { %2888 = vmatprep.subr.bf16.mxu0 %v2887_v31 }
  0x3f   :  { %2890 = vmatpush1.bf16.msra.mxu0 %v2889_v34 }
  0x40   :  { %2892 = vmatprep.subr.bf16.mxu0 %v2891_v37 }
  0x43   :  { %2894 = vmatpush1.bf16.msra.mxu0 %v2893_v40 }
  0x44   :  { %2896 = vmatprep.subr.bf16.mxu0 %v2895_v43 }
  0x47   :  { %2898 = vmatpush1.bf16.msra.mxu0 %v2897_v46 }
  0x48   :  { %2512 = vmatprep.subr.msk.mxu0 %vm102_vm0, %v2511_v47 }
  0x4b   :  { %2513 = vmatpush1.msk.msra.mxu0 %vm102_vm0, %v2510_v48 }
  0x4c   :  { %2514 = vmatmul.mubr.msk.f32.vlgmr.msra.gmra.mrb[12].mxu0 %vm5138_vm2, %v3457_v1 }
  0x4d   :  { %1318 = vmatprep.mubr.f32.mxu0 %v3219_v7 }
  0x50   :  { %2515 = vmatmul.mubr.msk.f32.gmra.mrb[14].mxu0 %vm5138_vm2, %v3472_v8 }
  0x8a   :  { %v52_v49 = vpop.permute.xlu0 %51 }
  0x93   :  { %v57_v55 = vpop.permute.xlu0 %56 }
  0xe1   :  { %v175_v50 = vpop.f32.mrb[0].mxu0 }
  0xe2   :  { %v176_v51 = vadd.f32 %v175_v50, %v52_v49  ;;  %v177_v52 = vpop.f32.mrb[1].mxu0 }
  0xe3   :  { %v178_v53 = vadd.f32 %v177_v52, %v52_v49 }
  0xe4   :  { %v186_v54 = vmax.f32 %v176_v51, 0.0 }
  0xe5   :  { %v187_v56 = vmax.f32 %v178_v53, 0.0  ;;  %v181_v57 = vpop.f32.mrb[2].mxu0 }
  0xe6   :  { %v182_v58 = vadd.f32 %v181_v57, %v57_v55  ;;  %v183_v59 = vpop.f32.mrb[3].mxu0  ;;  %218 = vrot.lane.b32.xlu0 %v186_v54, %s3221_s1  ;;  %199 = vrot.lane.b32.xlu1 %v186_v54, %s3222_s24 }
  0xe7   :  { %v184_v60 = vadd.f32 %v183_v59, %v57_v55  ;;  %192 = vst.msk [vmem:[#allocation2 + $0x8] sm:$0xff] %vm191_vm3, %v187_v56 }
  0xe8   :  { %v188_v61 = vmax.f32 %v182_v58, 0.0 }
  0xe9   :  { %v189_v62 = vmax.f32 %v184_v60, 0.0 }
  0xea   :  { %237 = vrot.lane.b32.xlu0 %v186_v54, %s3223_s25  ;;  %201 = vrot.lane.b32.xlu1 %v187_v56, %s3222_s24  ;;  %v2773_v63 = vpack.c.bf16 %v188_v61, %v186_v54 }
  0xeb   :  { %194 = vst.msk [vmem:[#allocation2 + $0x18] sm:$0xff] %vm191_vm3, %v189_v62 }
  0xee   :  { %256 = vrot.lane.b32.xlu0 %v186_v54, %s3224_s26  ;;  %220 = vrot.lane.b32.xlu1 %v187_v56, %s3221_s1  ;;  %v352_v0 = vld [vmem:[#allocation2 + $0x8] sm:$0xff] }
  0xf2   :  { %275 = vrot.lane.b32.xlu0 %v186_v54, %s3225_s27  ;;  %239 = vrot.lane.b32.xlu1 %v187_v56, %s3223_s25  ;;  %v354_v1 = vld [vmem:[#allocation2 + $0x18] sm:$0xff] }
  0xf3   :  { %v2771_v2 = vpack.c.bf16 %v354_v1, %v352_v0 }
  0xf5   :  { %2772 = vmatprep.subr.bf16.mxu1 %v2771_v2 }
  0xf6   :  { %294 = vrot.lane.b32.xlu0 %v186_v54, %s3226_s28  ;;  %258 = vrot.lane.b32.xlu1 %v187_v56, %s3224_s26 }
  0xf7   :  { %2774 = vmatpush1.bf16.msra.mxu1 %v2773_v63 }
  0xfa   :  { %313 = vrot.lane.b32.xlu0 %v186_v54, %s3227_s29  ;;  %277 = vrot.lane.b32.xlu1 %v187_v56, %s3225_s27 }
  0xfb   :  { %v3590_v3 = vpop.f32.mrb[4].mxu0 }
  0xfc   :  { %v3592_v4 = vpop.f32.mrb[5].mxu0 }
  0xfe   :  { %332 = vrot.lane.b32.xlu0 %v186_v54, %s3228_s30  ;;  %296 = vrot.lane.b32.xlu1 %v187_v56, %s3226_s28 }
  0xff   :  { %v3596_v5 = vpop.f32.mrb[6].mxu0 }
 0x100   :  { %v3598_v6 = vpop.f32.mrb[7].mxu0 }
 0x102   :  { %203 = vrot.lane.b32.xlu0 %v188_v61, %s3222_s24  ;;  %315 = vrot.lane.b32.xlu1 %v187_v56, %s3227_s29 }
 0x105   :  { %v935_v8 = vpop.f32.mrb[8].mxu0 }
 0x106   :  { %v936_v9 = vadd.f32 %v935_v8, %v52_v49  ;;  %v937_v10 = vpop.f32.mrb[9].mxu0  ;;  %222 = vrot.lane.b32.xlu0 %v188_v61, %s3221_s1  ;;  %334 = vrot.lane.b32.xlu1 %v187_v56, %s3228_s30 }
 0x107   :  { %v938_v11 = vadd.f32 %v937_v10, %v52_v49 }
 0x108   :  { %v3604_v12 = vmax.f32 %v936_v9, 0.0 }
 0x109   :  { %v947_v13 = vmax.f32 %v938_v11, 0.0  ;;  %v941_v14 = vpop.f32.mrb[10].mxu0 }
 0x10a   :  { %v942_v15 = vadd.f32 %v941_v14, %v57_v55  ;;  %v943_v16 = vpop.f32.mrb[11].mxu0  ;;  %241 = vrot.lane.b32.xlu0 %v188_v61, %s3223_s25  ;;  %205 = vrot.lane.b32.xlu1 %v189_v62, %s3222_s24 }
 0x10b   :  { %951 = vst.msk [vmem:[#allocation2 + $0x8] sm:$0xff] %vm191_vm3, %v947_v13  ;;  %v944_v17 = vadd.f32 %v943_v16, %v57_v55 }
 0x10c   :  { %v3609_v18 = vmax.f32 %v942_v15, 0.0 }
 0x10d   :  { %v3611_v19 = vmax.f32 %v944_v17, 0.0 }
 0x10e   :  { %260 = vrot.lane.b32.xlu0 %v188_v61, %s3224_s26  ;;  %224 = vrot.lane.b32.xlu1 %v189_v62, %s3221_s1 }
 0x10f   :  { %953 = vst.msk [vmem:[#allocation2 + $0x18] sm:$0xff] %vm191_vm3, %v3611_v19 }
 0x112   :  { %279 = vrot.lane.b32.xlu0 %v188_v61, %s3225_s27  ;;  %243 = vrot.lane.b32.xlu1 %v189_v62, %s3223_s25 }
 0x116   :  { %298 = vrot.lane.b32.xlu0 %v188_v61, %s3226_s28  ;;  %262 = vrot.lane.b32.xlu1 %v189_v62, %s3224_s26 }
 0x11a   :  { %317 = vrot.lane.b32.xlu0 %v188_v61, %s3227_s29  ;;  %281 = vrot.lane.b32.xlu1 %v189_v62, %s3225_s27 }
 0x11e   :  { %336 = vrot.lane.b32.xlu0 %v188_v61, %s3228_s30  ;;  %300 = vrot.lane.b32.xlu1 %v189_v62, %s3226_s28 }
 0x11f   :  { %v3697_v28 = vpop.f32.mrb[12].mxu0 }
 0x120   :  { %v3701_v29 = vpop.f32.mrb[13].mxu0 }
 0x122   :  { %958 = vrot.lane.b32.xlu0 %v3604_v12, %s3222_s24  ;;  %319 = vrot.lane.b32.xlu1 %v189_v62, %s3227_s29 }
 0x123   :  { %v3717_v35 = vpop.f32.mrb[14].mxu0 }
 0x124   :  { %v3725_v38 = vpop.f32.mrb[15].mxu0 }
 0x126   :  { %976 = vrot.lane.b32.xlu0 %v3604_v12, %s3221_s1  ;;  %338 = vrot.lane.b32.xlu1 %v189_v62, %s3228_s30 }
 0x12a   :  { %994 = vrot.lane.b32.xlu0 %v3604_v12, %s3223_s25  ;;  %960 = vrot.lane.b32.xlu1 %v947_v13, %s3222_s24 }
 0x12e   :  { %1012 = vrot.lane.b32.xlu0 %v3604_v12, %s3224_s26  ;;  %978 = vrot.lane.b32.xlu1 %v947_v13, %s3221_s1 }
 0x132   :  { %1030 = vrot.lane.b32.xlu0 %v3604_v12, %s3225_s27  ;;  %996 = vrot.lane.b32.xlu1 %v947_v13, %s3223_s25 }
 0x136   :  { %1048 = vrot.lane.b32.xlu0 %v3604_v12, %s3226_s28  ;;  %1014 = vrot.lane.b32.xlu1 %v947_v13, %s3224_s26 }
 0x13a   :  { %1066 = vrot.lane.b32.xlu0 %v3604_v12, %s3227_s29  ;;  %1032 = vrot.lane.b32.xlu1 %v947_v13, %s3225_s27 }
 0x13e   :  { %1084 = vrot.lane.b32.xlu0 %v3604_v12, %s3228_s30  ;;  %1050 = vrot.lane.b32.xlu1 %v947_v13, %s3226_s28 }
 0x142   :  { %962 = vrot.lane.b32.xlu0 %v3609_v18, %s3222_s24  ;;  %1068 = vrot.lane.b32.xlu1 %v947_v13, %s3227_s29 }
 0x146   :  { %980 = vrot.lane.b32.xlu0 %v3609_v18, %s3221_s1  ;;  %1086 = vrot.lane.b32.xlu1 %v947_v13, %s3228_s30 }
 0x14a   :  { %998 = vrot.lane.b32.xlu0 %v3609_v18, %s3223_s25  ;;  %964 = vrot.lane.b32.xlu1 %v3611_v19, %s3222_s24 }
 0x14e   :  { %1016 = vrot.lane.b32.xlu0 %v3609_v18, %s3224_s26  ;;  %982 = vrot.lane.b32.xlu1 %v3611_v19, %s3221_s1 }
 0x152   :  { %1034 = vrot.lane.b32.xlu0 %v3609_v18, %s3225_s27  ;;  %1000 = vrot.lane.b32.xlu1 %v3611_v19, %s3223_s25 }
 0x156   :  { %1052 = vrot.lane.b32.xlu0 %v3609_v18, %s3226_s28  ;;  %1018 = vrot.lane.b32.xlu1 %v3611_v19, %s3224_s26 }
 0x158   :  { %v3678_v21 = vpop.permute.xlu0 %218  ;;  %v200_v22 = vpop.permute.xlu1 %199 }
 0x15a   :  { %1070 = vrot.lane.b32.xlu0 %v3609_v18, %s3227_s29  ;;  %1036 = vrot.lane.b32.xlu1 %v3611_v19, %s3225_s27 }
 0x15c   :  { %v3684_v23 = vpop.permute.xlu0 %237  ;;  %v202_v24 = vpop.permute.xlu1 %201 }
 0x15d   :  { %215 = vst.msk [vmem:[#allocation2 + $0x28] sm:$0xff] %vm191_vm3, %v202_v24  ;;  %v208_v54 = vsel %vm207_vm5, %v200_v22, %v202_v24 }
 0x15e   :  { %1088 = vrot.lane.b32.xlu0 %v3609_v18, %s3228_s30  ;;  %1054 = vrot.lane.b32.xlu1 %v3611_v19, %s3226_s28 }
 0x160   :  { %v3694_v26 = vpop.permute.xlu0 %256  ;;  %v221_v27 = vpop.permute.xlu1 %220 }
 0x161   :  { %234 = vst.msk [vmem:[#allocation2 + $0x48] sm:$0xff] %vm191_vm3, %v221_v27  ;;  %v227_v62 = vsel %vm226_vm6, %v3678_v21, %v221_v27 }
 0x162   :  { %75 = vperm.xlu0 %3182, %v71_v25   ;;  %1072 = vrot.lane.b32.xlu1 %v3611_v19, %s3227_s29 }
 0x164   :  { %v3703_v30 = vpop.permute.xlu0 %275  ;;  %v240_v31 = vpop.permute.xlu1 %239  ;;  %v356_v52 = vld [vmem:[#allocation2 + $0x28] sm:$0xff] }
 0x165   :  { %253 = vst.msk [vmem:[#allocation2 + $0x68] sm:$0xff] %vm191_vm3, %v240_v31  ;;  %v246_v11 = vsel %vm5141_vm7, %v3684_v23, %v240_v31 }
 0x166   :  { %1090 = vrot.lane.b32.xlu1 %v3611_v19, %s3228_s30 }
 0x168   :  { %v3711_v33 = vpop.permute.xlu0 %294  ;;  %v3713_v34 = vpop.permute.xlu1 %258  ;;  %v360_v60 = vld [vmem:[#allocation2 + $0x48] sm:$0xff] }
 0x169   :  { %272 = vst.msk [vmem:[#allocation2 + $0x88] sm:$0xff] %vm191_vm3, %v3713_v34  ;;  %v265_v22 = vsel %vm264_vm8, %v3694_v26, %v3713_v34 }
 0x16a   :  { %80 = vperm.xlu1 %3183, %v72_v32  }
 0x16c   :  { %v3719_v36 = vpop.permute.xlu0 %313  ;;  %v3721_v37 = vpop.permute.xlu1 %277  ;;  %v364_v9 = vld [vmem:[#allocation2 + $0x68] sm:$0xff] }
 0x16d   :  { %291 = vst.msk [vmem:[#allocation2 + $0xa8] sm:$0xff] %vm191_vm3, %v3721_v37 }
 0x170   :  { %v3727_v39 = vpop.permute.xlu0 %332  ;;  %v3729_v40 = vpop.permute.xlu1 %296  ;;  %v368_v19 = vld [vmem:[#allocation2 + $0x88] sm:$0xff] }
 0x171   :  { %310 = vst.msk [vmem:[#allocation2 + $0xc8] sm:$0xff] %vm191_vm3, %v3729_v40 }
 0x174   :  { %v204_v41 = vpop.permute.xlu0 %203  ;;  %v3733_v42 = vpop.permute.xlu1 %315  ;;  %v372_v32 = vld [vmem:[#allocation2 + $0xa8] sm:$0xff] }
 0x175   :  { %329 = vst.msk [vmem:[#allocation2 + $0xe8] sm:$0xff] %vm191_vm3, %v3733_v42 }
 0x178   :  { %v223_v43 = vpop.permute.xlu0 %222  ;;  %v3737_v44 = vpop.permute.xlu1 %334 }
 0x179   :  { %348 = vst.msk [vmem:[#allocation2 + $0x108] sm:$0xff] %vm191_vm3, %v3737_v44 }
 0x17c   :  { %v242_v45 = vpop.permute.xlu0 %241  ;;  %v206_v46 = vpop.permute.xlu1 %205 }
 0x17d   :  { %217 = vst.msk [vmem:[#allocation2 + $0x38] sm:$0xff] %vm191_vm3, %v206_v46  ;;  %v209_v49 = vsel %vm207_vm5, %v204_v41, %v206_v46 }
 0x17e   :  { %v2777_v56 = vpack.c.bf16 %v209_v49, %v208_v54  ;;  %v380_v54 = vld [vmem:[#allocation2 + $0xe8] sm:$0xff] }
 0x180   :  { %v261_v47 = vpop.permute.xlu0 %260  ;;  %v225_v48 = vpop.permute.xlu1 %224 }
 0x181   :  { %236 = vst.msk [vmem:[#allocation2 + $0x58] sm:$0xff] %vm191_vm3, %v225_v48  ;;  %v228_v57 = vsel %vm226_vm6, %v223_v43, %v225_v48  ;;  %v284_v43 = vsel %vm283_vm9, %v3703_v30, %v3721_v37  ;;  %v376_v48 = vld [vmem:[#allocation2 + $0xc8] sm:$0xff] }
 0x182   :  { %v2781_v0 = vpack.c.bf16 %v228_v57, %v227_v62 }
 0x184   :  { %v280_v50 = vpop.permute.xlu0 %279  ;;  %v244_v51 = vpop.permute.xlu1 %243  ;;  %v358_v53 = vld [vmem:[#allocation2 + $0x38] sm:$0xff] }
 0x185   :  { %255 = vst.msk [vmem:[#allocation2 + $0x78] sm:$0xff] %vm191_vm3, %v244_v51  ;;  %v2775_v55 = vpack.c.bf16 %v358_v53, %v356_v52  ;;  %v247_v1 = vsel %vm5141_vm7, %v242_v45, %v244_v51 }
 0x186   :  { %v2785_v14 = vpack.c.bf16 %v247_v1, %v246_v11  ;;  %v3788_v11 = vld [vmem:[%s5130_s4] sm:$0xff] }
 0x187   :  { %2776 = vmatprep.subr.bf16.mxu1 %v2775_v55 }
 0x188   :  { %v299_v58 = vpop.permute.xlu0 %298  ;;  %v263_v59 = vpop.permute.xlu1 %262  ;;  %2778 = vmatpush1.bf16.msra.mxu1 %v2777_v56  ;;  %v362_v61 = vld [vmem:[#allocation2 + $0x58] sm:$0xff]  ;;  %v322_v56 = vsel %vm321_vm10, %v3719_v36, %v3733_v42  ;;  %v341_v36 = vsel %vm340_vm11, %v3727_v39, %v3737_v44 }
 0x189   :  { %274 = vst.msk [vmem:[#allocation2 + $0x98] sm:$0xff] %vm191_vm3, %v263_v59  ;;  %v2779_v63 = vpack.c.bf16 %v362_v61, %v360_v60  ;;  %v266_v15 = vsel %vm264_vm8, %v261_v47, %v263_v59  ;;  %v384_v61 = vld [vmem:[#allocation2 + $0x108] sm:$0xff]  ;;  %v3797_v44 = vld [vmem:[%s5130_s4 + $0x18] sm:$0xff] }
 0x18a   :  { %v2789_v24 = vpack.c.bf16 %v266_v15, %v265_v22 }
 0x18b   :  { %2780 = vmatprep.subr.bf16.mxu1 %v2779_v63  ;;  %v1105_v63 = vld [vmem:[#allocation2 + $0x18] sm:$0xff] }
 0x18c   :  { %v318_v2 = vpop.permute.xlu0 %317  ;;  %v282_v8 = vpop.permute.xlu1 %281  ;;  %2782 = vmatpush1.bf16.msra.mxu1 %v2781_v0  ;;  %v366_v10 = vld [vmem:[#allocation2 + $0x78] sm:$0xff] }
 0x18d   :  { %293 = vst.msk [vmem:[#allocation2 + $0xb8] sm:$0xff] %vm191_vm3, %v282_v8  ;;  %v2783_v13 = vpack.c.bf16 %v366_v10, %v364_v9  ;;  %v285_v25 = vsel %vm283_vm9, %v280_v50, %v282_v8  ;;  %v303_v50 = vsel %vm5138_vm2, %v3711_v33, %v3729_v40 }
 0x18e   :  { %v2793_v34 = vpack.c.bf16 %v285_v25, %v284_v43 }
 0x18f   :  { %2784 = vmatprep.subr.bf16.mxu1 %v2783_v13  ;;  %v2841_v13 = vpack.c.bf16 %v3609_v18, %v3604_v12 }
 0x190   :  { %v337_v16 = vpop.permute.xlu0 %336  ;;  %v301_v17 = vpop.permute.xlu1 %300  ;;  %2786 = vmatpush1.bf16.msra.mxu1 %v2785_v14  ;;  %v370_v21 = vld [vmem:[#allocation2 + $0x98] sm:$0xff] }
 0x191   :  { %312 = vst.msk [vmem:[#allocation2 + $0xd8] sm:$0xff] %vm191_vm3, %v301_v17  ;;  %v2787_v23 = vpack.c.bf16 %v370_v21, %v368_v19  ;;  %v304_v45 = vsel %vm5138_vm2, %v299_v58, %v301_v17 }
 0x192   :  { %v2797_v30 = vpack.c.bf16 %v304_v45, %v303_v50 }
 0x193   :  { %2788 = vmatprep.subr.bf16.mxu1 %v2787_v23 }
 0x194   :  { %v959_v27 = vpop.permute.xlu0 %958  ;;  %v320_v31 = vpop.permute.xlu1 %319  ;;  %2790 = vmatpush1.bf16.msra.mxu1 %v2789_v24  ;;  %v374_v41 = vld [vmem:[#allocation2 + $0xb8] sm:$0xff] }
 0x195   :  { %331 = vst.msk [vmem:[#allocation2 + $0xf8] sm:$0xff] %vm191_vm3, %v320_v31  ;;  %v2791_v26 = vpack.c.bf16 %v374_v41, %v372_v32  ;;  %v323_v37 = vsel %vm321_vm10, %v318_v2, %v320_v31  ;;  %v1103_v2 = vld [vmem:[#allocation2 + $0x8] sm:$0xff] }
 0x196   :  { %v2801_v40 = vpack.c.bf16 %v323_v37, %v322_v56  ;;  %v2839_v8 = vpack.c.bf16 %v1105_v63, %v1103_v2 }
 0x197   :  { %2792 = vmatprep.subr.bf16.mxu1 %v2791_v26 }
 0x198   :  { %v977_v46 = vpop.permute.xlu0 %976  ;;  %v339_v47 = vpop.permute.xlu1 %338  ;;  %2794 = vmatpush1.bf16.msra.mxu1 %v2793_v34  ;;  %v378_v49 = vld [vmem:[#allocation2 + $0xd8] sm:$0xff] }
 0x199   :  { %350 = vst.msk [vmem:[#allocation2 + $0x118] sm:$0xff] %vm191_vm3, %v339_v47  ;;  %v2795_v51 = vpack.c.bf16 %v378_v49, %v376_v48  ;;  %v342_v58 = vsel %vm340_vm11, %v337_v16, %v339_v47  ;;  %v3807_v16 = vld [vmem:[%s5130_s4 + $0x10] sm:$0xff]  ;;  %s3230_s4 = smov 38  }
 0x19a   :  { %v2805_v1 = vpack.c.bf16 %v342_v58, %v341_v36 }
 0x19b   :  { %2796 = vmatprep.subr.bf16.mxu1 %v2795_v51 }
 0x19c   :  { %v995_v52 = vpop.permute.xlu0 %994  ;;  %v961_v53 = vpop.permute.xlu1 %960  ;;  %2798 = vmatpush1.bf16.msra.mxu1 %v2797_v30  ;;  %v382_v55 = vld [vmem:[#allocation2 + $0xf8] sm:$0xff] }
 0x19d   :  { %v3774_v57 = vsel %vm207_vm5, %v959_v27, %v961_v53  ;;  %973 = vst.msk [vmem:[#allocation2 + $0x28] sm:$0xff] %vm191_vm3, %v961_v53  ;;  %v2799_v33 = vpack.c.bf16 %v382_v55, %v380_v54 }
 0x19f   :  { %2800 = vmatprep.subr.bf16.mxu1 %v2799_v33 }
 0x1a0   :  { %v1013_v59 = vpop.permute.xlu0 %1012  ;;  %v979_v60 = vpop.permute.xlu1 %978  ;;  %2802 = vmatpush1.bf16.msra.mxu1 %v2801_v40  ;;  %v386_v62 = vld [vmem:[#allocation2 + $0x118] sm:$0xff] }
 0x1a1   :  { %v3782_v42 = vsel %vm226_vm6, %v977_v46, %v979_v60  ;;  %991 = vst.msk [vmem:[#allocation2 + $0x48] sm:$0xff] %vm191_vm3, %v979_v60  ;;  %v2803_v0 = vpack.c.bf16 %v386_v62, %v384_v61 }
 0x1a3   :  { %2804 = vmatprep.subr.bf16.mxu1 %v2803_v0 }
 0x1a4   :  { %v1031_v9 = vpop.permute.xlu0 %1030  ;;  %v997_v10 = vpop.permute.xlu1 %996  ;;  %2806 = vmatpush1.bf16.msra.mxu1 %v2805_v1  ;;  %v1107_v48 = vld [vmem:[#allocation2 + $0x28] sm:$0xff] }
 0x1a5   :  { %v3791_v39 = vsel %vm5141_vm7, %v995_v52, %v997_v10  ;;  %1009 = vst.msk [vmem:[#allocation2 + $0x68] sm:$0xff] %vm191_vm3, %v997_v10  ;;  %2840 = vmatprep.subr.bf16.mxu1 %v2839_v8 }
 0x1a7   :  { %459 = vmatmul.mubr.f32.vlgmr.msra.gmra.mrb[0].mxu1 %v3788_v11 }
 0x1a8   :  { %v1049_v14 = vpop.permute.xlu0 %1048  ;;  %v1015_v15 = vpop.permute.xlu1 %1014  ;;  %2842 = vmatpush1.bf16.msra.mxu1 %v2841_v13  ;;  %2465 = vmatprep.mubr.msk.f32.mxu1 %vm387_vm4, %v3797_v44  ;;  %v1111_v53 = vld [vmem:[#allocation2 + $0x48] sm:$0xff] }
 0x1a9   :  { %v3810_v17 = vsel %vm264_vm8, %v1013_v59, %v1015_v15  ;;  %1027 = vst.msk [vmem:[#allocation2 + $0x88] sm:$0xff] %vm191_vm3, %v1015_v15 }
 0x1ab   :  { %465 = vmatmul.mubr.f32.gmra.mrb[2].mxu1 %v3807_v16 }
 0x1ac   :  { %v1067_v12 = vpop.permute.xlu0 %1066  ;;  %v1033_v18 = vpop.permute.xlu1 %1032  ;;  %2484 = vmatprep.mubr.msk.f32.mxu1 %vm387_vm4, %v3634_v20  ;;  %v1115_v59 = vld [vmem:[#allocation2 + $0x68] sm:$0xff] }
 0x1ad   :  { %v3817_v19 = vsel %vm283_vm9, %v1031_v9, %v1033_v18  ;;  %1045 = vst.msk [vmem:[#allocation2 + $0xa8] sm:$0xff] %vm191_vm3, %v1033_v18 }
 0x1b0   :  { %v1085_v21 = vpop.permute.xlu0 %1084  ;;  %v1051_v22 = vpop.permute.xlu1 %1050  ;;  %v1119_v36 = vld [vmem:[#allocation2 + $0x88] sm:$0xff] }
 0x1b1   :  { %v3821_v23 = vsel %vm5138_vm2, %v1049_v14, %v1051_v22  ;;  %1063 = vst.msk [vmem:[#allocation2 + $0xc8] sm:$0xff] %vm191_vm3, %v1051_v22  ;;  %v587_v14 = vlaneseq }
 0x1b3   :  { %vm3987_vm12 = vcmp.lt.s32.totalorder %v587_v14, 166  ;;  %vm4229_vm13 = vcmp.ge.s32.totalorder %v587_v14, 38  ;;  %vm4234_vm14 = vcmp.lt.s32.totalorder %v587_v14, 204  ;;  %vm4243_vm0 = vcmp.ge.s32.totalorder %v587_v14, 76 }
 0x1b4   :  { %v963_v24 = vpop.permute.xlu0 %962  ;;  %v1069_v25 = vpop.permute.xlu1 %1068  ;;  %v1123_v10 = vld [vmem:[#allocation2 + $0xa8] sm:$0xff]  ;;  %vm5139_vm15 = vmand %vm4229_vm13, %vm4234_vm14  ;;  %vm4248_vm1 = vcmp.lt.s32.totalorder %v587_v14, 242 }
 0x1b5   :  { %v3825_v27 = vsel %vm321_vm10, %v1067_v12, %v1069_v25  ;;  %1081 = vst.msk [vmem:[#allocation2 + $0xe8] sm:$0xff] %vm191_vm3, %v1069_v25 }
 0x1b8   :  { %v981_v20 = vpop.permute.xlu0 %980  ;;  %v1087_v31 = vpop.permute.xlu1 %1086  ;;  %v1127_v22 = vld [vmem:[#allocation2 + $0xc8] sm:$0xff] }
 0x1b9   :  { %v3829_v32 = vsel %vm340_vm11, %v1085_v21, %v1087_v31  ;;  %1099 = vst.msk [vmem:[#allocation2 + $0x108] sm:$0xff] %vm191_vm3, %v1087_v31 }
 0x1bc   :  { %v999_v41 = vpop.permute.xlu0 %998  ;;  %v965_v43 = vpop.permute.xlu1 %964 }
 0x1bd   :  { %v967_v26 = vsel %vm207_vm5, %v963_v24, %v965_v43  ;;  %975 = vst.msk [vmem:[#allocation2 + $0x38] sm:$0xff] %vm191_vm3, %v965_v43  ;;  %vm4259_vm5 = vcmp.lt.s32.totalorder %v587_v14, 280 }
 0x1be   :  { %v2845_v37 = vpack.c.bf16 %v967_v26, %v3774_v57 }
 0x1c0   :  { %v1017_v34 = vpop.permute.xlu0 %1016  ;;  %v983_v45 = vpop.permute.xlu1 %982 }
 0x1c1   :  { %v985_v46 = vsel %vm226_vm6, %v981_v20, %v983_v45  ;;  %993 = vst.msk [vmem:[#allocation2 + $0x58] sm:$0xff] %vm191_vm3, %v983_v45  ;;  %v84_v45 = vld [vmem:[%s5136_s10] sm:$0x3]  ;;  %s3233_s10 = smov 62   ;;  %vm5140_vm6 = vcmask 621568  }
 0x1c2   :  { %v2849_v33 = vpack.c.bf16 %v985_v46, %v3782_v42 }
 0x1c4   :  { %v1001_v47 = vpop.permute.xlu1 %1000  ;;  %v1109_v49 = vld [vmem:[#allocation2 + $0x38] sm:$0xff]  ;;  %v1035_v30 = vpop.permute.xlu0 %1034 }
 0x1c5   :  { %v1003_v50 = vsel %vm5141_vm7, %v999_v41, %v1001_v47  ;;  %1011 = vst.msk [vmem:[#allocation2 + $0x78] sm:$0xff] %vm191_vm3, %v1001_v47  ;;  %v2843_v51 = vpack.c.bf16 %v1109_v49, %v1107_v48  ;;  %v1131_v41 = vld [vmem:[#allocation2 + $0xe8] sm:$0xff] }
 0x1c6   :  { %v2853_v62 = vpack.c.bf16 %v1003_v50, %v3791_v39  ;;  %v1135_v47 = vld [vmem:[#allocation2 + $0x108] sm:$0xff] }
 0x1c7   :  { %2844 = vmatprep.subr.bf16.mxu1 %v2843_v51 }
 0x1c8   :  { %v1019_v52 = vpop.permute.xlu1 %1018  ;;  %2846 = vmatpush1.bf16.msra.mxu1 %v2845_v37  ;;  %v1113_v54 = vld [vmem:[#allocation2 + $0x58] sm:$0xff]  ;;  %v1053_v40 = vpop.permute.xlu0 %1052 }
 0x1c9   :  { %v1021_v55 = vsel %vm264_vm8, %v1017_v34, %v1019_v52  ;;  %1029 = vst.msk [vmem:[#allocation2 + $0x98] sm:$0xff] %vm191_vm3, %v1019_v52  ;;  %v2847_v56 = vpack.c.bf16 %v1113_v54, %v1111_v53  ;;  %vm4269_vm8 = vcmp.ge.s32.totalorder %v587_v14, 24 }
 0x1ca   :  { %v2857_v8 = vpack.c.bf16 %v1021_v55, %v3810_v17  ;;  %v3852_v17 = vshrl.u32 %v587_v14, 7 }
 0x1cb   :  { %2848 = vmatprep.subr.bf16.mxu1 %v2847_v56 }
 0x1cc   :  { %v1037_v58 = vpop.permute.xlu1 %1036  ;;  %2850 = vmatpush1.bf16.msra.mxu1 %v2849_v33  ;;  %v1117_v60 = vld [vmem:[#allocation2 + $0x78] sm:$0xff]  ;;  %v1071_v2 = vpop.permute.xlu0 %1070  ;;  %v589_v43 = vsub.s32 0, %v3852_v17  ;;  %v593_v26 = vsub.s32 1, %v3852_v17 }
 0x1cd   :  { %v1039_v57 = vsel %vm283_vm9, %v1035_v30, %v1037_v58  ;;  %1047 = vst.msk [vmem:[#allocation2 + $0xb8] sm:$0xff] %vm191_vm3, %v1037_v58  ;;  %v2851_v61 = vpack.c.bf16 %v1117_v60, %v1115_v59  ;;  %vm4274_vm9 = vcmp.lt.s32.totalorder %v587_v14, 190 }
 0x1ce   :  { %v2861_v12 = vpack.c.bf16 %v1039_v57, %v3817_v19  ;;  %v3865_v49 = vrot.slane %v84_v45, %v593_v26 }
 0x1cf   :  { %2852 = vmatprep.subr.bf16.mxu1 %v2851_v61 }
 0x1d0   :  { %v1055_v63 = vpop.permute.xlu1 %1054  ;;  %2854 = vmatpush1.bf16.msra.mxu1 %v2853_v62  ;;  %v1121_v0 = vld [vmem:[#allocation2 + $0x98] sm:$0xff]  ;;  %v1089_v18 = vpop.permute.xlu0 %1088 }
 0x1d1   :  { %v1057_v42 = vsel %vm5138_vm2, %v1053_v40, %v1055_v63  ;;  %1065 = vst.msk [vmem:[#allocation2 + $0xd8] sm:$0xff] %vm191_vm3, %v1055_v63  ;;  %v2855_v1 = vpack.c.bf16 %v1121_v0, %v1119_v36  ;;  %vm5147_vm2 = vmand %vm4269_vm8, %vm4274_vm9 }
 0x1d2   :  { %v2865_v31 = vpack.c.bf16 %v1057_v42, %v3821_v23  ;;  %v3863_v23 = vrot.slane %v84_v45, %v589_v43 }
 0x1d3   :  { %2856 = vmatprep.subr.bf16.mxu1 %v2855_v1 }
 0x1d4   :  { %v1073_v9 = vpop.permute.xlu1 %1072  ;;  %2858 = vmatpush1.bf16.msra.mxu1 %v2857_v8  ;;  %v1125_v13 = vld [vmem:[#allocation2 + $0xb8] sm:$0xff] }
 0x1d5   :  { %v1075_v39 = vsel %vm321_vm10, %v1071_v2, %v1073_v9  ;;  %1083 = vst.msk [vmem:[#allocation2 + $0xf8] sm:$0xff] %vm191_vm3, %v1073_v9  ;;  %v2859_v15 = vpack.c.bf16 %v1125_v13, %v1123_v10  ;;  %vm5142_vm10 = vmand %vm4243_vm0, %vm4248_vm1 }
 0x1d6   :  { %v2869_v46 = vpack.c.bf16 %v1075_v39, %v3825_v27 }
 0x1d7   :  { %2860 = vmatprep.subr.bf16.mxu1 %v2859_v15 }
 0x1d8   :  { %v1091_v21 = vpop.permute.xlu1 %1090  ;;  %2862 = vmatpush1.bf16.msra.mxu1 %v2861_v12  ;;  %v1129_v24 = vld [vmem:[#allocation2 + $0xd8] sm:$0xff] }
 0x1d9   :  { %v1093_v25 = vsel %vm340_vm11, %v1089_v18, %v1091_v21  ;;  %1101 = vst.msk [vmem:[#allocation2 + $0x118] sm:$0xff] %vm191_vm3, %v1091_v21  ;;  %v2863_v20 = vpack.c.bf16 %v1129_v24, %v1127_v22 }
 0x1da   :  { %v2873_v30 = vpack.c.bf16 %v1093_v25, %v3829_v32 }
 0x1db   :  { %2864 = vmatprep.subr.bf16.mxu1 %v2863_v20 }
 0x1dc   :  { %2866 = vmatpush1.bf16.msra.mxu1 %v2865_v31  ;;  %v1133_v19 = vld [vmem:[#allocation2 + $0xf8] sm:$0xff] }
 0x1dd   :  { %v2867_v34 = vpack.c.bf16 %v1133_v19, %v1131_v41 }
 0x1df   :  { %2868 = vmatprep.subr.bf16.mxu1 %v2867_v34 }
 0x1e0   :  { %2870 = vmatpush1.bf16.msra.mxu1 %v2869_v46  ;;  %v1137_v48 = vld [vmem:[#allocation2 + $0x118] sm:$0xff] }
 0x1e1   :  { %v76_v50 = vpop.permute.xlu0 %75  ;;  %v2871_v51 = vpack.c.bf16 %v1137_v48, %v1135_v47 }
 0x1e2   :  { %v578_v37 = vadd.f32 %v3592_v4, %v76_v50  ;;  %v1317_v52 = vadd.f32 %v3701_v29, %v76_v50  ;;  %v576_v53 = vadd.f32 %v3590_v3, %v76_v50  ;;  %v1315_v27 = vadd.f32 %v3697_v28, %v76_v50 }
 0x1e3   :  { %2872 = vmatprep.subr.bf16.mxu1 %v2871_v51 }
 0x1e4   :  { %2874 = vmatpush1.bf16.msra.mxu1 %v2873_v30  ;;  %v597_v54 = vmul.f32 %v3863_v23, %v576_v53  ;;  %v598_v55 = vmul.f32 %v3865_v49, %v578_v37  ;;  %v1325_v56 = vmul.f32 %v1315_v27, %v3863_v23  ;;  %v1326_v33 = vmul.f32 %v1317_v52, %v3865_v49 }
 0x1e6   :  { %v601_v32 = vsel %vm191_vm3, %v598_v55, 0.0  ;;  %v1329_v4 = vsel %vm191_vm3, %v1326_v33, 0.0 }
 0x1e7   :  { %v602_v40 = vadd.f32 %v601_v32, %v597_v54  ;;  %v1330_v29 = vadd.f32 %v1329_v4, %v1325_v56  ;;  %1203 = vmatmul.mubr.f32.vlgmr.msra.gmra.mrb[4].mxu1 %v3788_v11  ;;  %v59_v32 = vld [vmem:[%s5131_s5] sm:$0xff] }
 0x1e8   :  { %2485 = vmatprep.mubr.msk.f32.mxu1 %vm387_vm4, %v3797_v44  ;;  %vm4254_vm4 = vcmp.ge.s32.totalorder %v587_v14, 114 }
 0x1e9   :  { %603 = vadd.xlane.f32.xlu0 %v602_v40  ;;  %1331 = vadd.xlane.f32.xlu1 %v1330_v29  ;;  %v81_v3 = vpop.permute.xlu1 %80  ;;  %vm5144_vm11 = vmand %vm4254_vm4, %vm4259_vm5 }
 0x1ea   :  { %v584_v28 = vadd.f32 %v3598_v6, %v81_v3  ;;  %v1321_v58 = vadd.f32 %v3717_v35, %v81_v3  ;;  %v1323_v59 = vadd.f32 %v3725_v38, %v81_v3  ;;  %v582_v60 = vadd.f32 %v3596_v5, %v81_v3 }
 0x1eb   :  { %1209 = vmatmul.mubr.f32.gmra.mrb[6].mxu1 %v3807_v16 }
 0x1ec   :  { %v1328_v57 = vmul.f32 %v1323_v59, %v3865_v49  ;;  %v599_v11 = vmul.f32 %v3863_v23, %v582_v60  ;;  %v600_v61 = vmul.f32 %v3865_v49, %v584_v28  ;;  %v1327_v44 = vmul.f32 %v1321_v58, %v3863_v23 }
 0x1ee   :  { %v605_v62 = vsel %vm191_vm3, %v600_v61, 0.0  ;;  %v1333_v6 = vsel %vm191_vm3, %v1328_v57, 0.0 }
 0x1ef   :  { %v606_v63 = vadd.f32 %v605_v62, %v599_v11  ;;  %v1334_v35 = vadd.f32 %v1333_v6, %v1327_v44 }
 0x1f1   :  { %607 = vadd.xlane.f32.xlu0 %v606_v63 }
 0x1f5   :  { %1335 = vadd.xlane.f32.xlu0 %v1334_v35 }
 0x276   :  { %v604_v38 = vpop.xlane.xlu0 %603  ;;  %v1332_v5 = vpop.xlane.xlu1 %1331 }
 0x277   :  { %v609_v36 = vmul.f32 0.0069444445, %v604_v38  ;;  %v1337_v16 = vmul.f32 0.0069444445, %v1332_v5  ;;  %v3229_v38 = vmov 1966171168  }
 0x278   :  { %v653_v5 = vunpack.c.l.s4 %v3229_v38 }
 0x279   :  { %v3892_v0 = vsub.f32 %v576_v53, %v609_v36  ;;  %v3894_v42 = vsub.f32 %v578_v37, %v609_v36  ;;  %v3896_v1 = vsub.f32 %v1315_v27, %v1337_v16  ;;  %v3898_v2 = vsub.f32 %v1317_v52, %v1337_v16 }
 0x27a   :  { %v3900_v8 = vpop.f32.mrb[0].mxu1 }
 0x27b   :  { %v616_v9 = vmul.f32 %v3894_v42, %v3865_v49  ;;  %v1344_v10 = vmul.f32 %v3898_v2, %v3865_v49  ;;  %v615_v13 = vmul.f32 %v3892_v0, %v3863_v23  ;;  %v1343_v39 = vmul.f32 %v3896_v1, %v3863_v23  ;;  %v3910_v15 = vpop.f32.mrb[1].mxu1 }
 0x27d   :  { %v619_v12 = vmul.f32 %v615_v13, %v615_v13  ;;  %v620_v18 = vmul.f32 %v616_v9, %v616_v9  ;;  %v1347_v21 = vmul.f32 %v1343_v39, %v1343_v39  ;;  %v1348_v22 = vmul.f32 %v1344_v10, %v1344_v10 }
 0x27e   :  { %v608_v24 = vpop.xlane.xlu0 %607  ;;  %v466_v4 = vpop.f32.mrb[2].mxu1  ;;  %v654_v39 = vunpack.c.0.s8 %v653_v5 }
 0x27f   :  { %v610_v25 = vmul.f32 0.0069444445, %v608_v24  ;;  %v623_v20 = vsel %vm191_vm3, %v620_v18, 0.0  ;;  %v1351_v31 = vsel %vm191_vm3, %v1348_v22, 0.0  ;;  %v3935_v40 = vpop.f32.mrb[3].mxu1 }
 0x280   :  { %v624_v41 = vadd.f32 %v623_v20, %v619_v12  ;;  %v1352_v19 = vadd.f32 %v1351_v31, %v1347_v21 }
 0x281   :  { %v3914_v43 = vsub.f32 %v582_v60, %v610_v25  ;;  %v3916_v26 = vsub.f32 %v584_v28, %v610_v25 }
 0x282   :  { %625 = vadd.xlane.f32.xlu1 %v624_v41  ;;  %v1336_v34 = vpop.xlane.xlu0 %1335  ;;  %1353 = vadd.xlane.f32.xlu0 %v1352_v19 }
 0x283   :  { %v618_v45 = vmul.f32 %v3916_v26, %v3865_v49  ;;  %v1338_v46 = vmul.f32 0.0069444445, %v1336_v34  ;;  %v617_v47 = vmul.f32 %v3914_v43, %v3863_v23 }
 0x285   :  { %v3922_v48 = vsub.f32 %v1321_v58, %v1338_v46  ;;  %v3924_v50 = vsub.f32 %v1323_v59, %v1338_v46  ;;  %v621_v51 = vmul.f32 %v617_v47, %v617_v47  ;;  %v622_v30 = vmul.f32 %v618_v45, %v618_v45  ;;  %v1556_v58 = vld [vmem:[%s5134_s8 + $0x80] sm:$0xff]  ;;  %v1557_v59 = vld [vmem:[%s5134_s8 + $0x88] sm:$0xff] }
 0x286   :  { %v2899_v60 = vpack.c.bf16 %v1557_v59, %v1556_v58 }
 0x287   :  { %v1346_v37 = vmul.f32 %v3924_v50, %v3865_v49  ;;  %v627_v52 = vsel %vm191_vm3, %v622_v30, 0.0  ;;  %v1345_v53 = vmul.f32 %v3922_v48, %v3863_v23  ;;  %v60_v23 = vld [vmem:[%s5131_s5 + $0x8] sm:$0xff]  ;;  %s3234_s5 = smov 10  }
 0x288   :  { %v628_v27 = vadd.f32 %v627_v52, %v621_v51  ;;  %2900 = vmatprep.subr.bf16.mxu0 %v2899_v60  ;;  %v1589_v52 = vld [vmem:[%s5134_s8 + $0x188] sm:$0xff] }
 0x289   :  { %v1349_v54 = vmul.f32 %v1345_v53, %v1345_v53  ;;  %v1350_v55 = vmul.f32 %v1346_v37, %v1346_v37 }
 0x28a   :  { %629 = vadd.xlane.f32.xlu0 %v628_v27 }
 0x28b   :  { %v1355_v56 = vsel %vm191_vm3, %v1350_v55, 0.0  ;;  %v1572_v55 = vld [vmem:[%s5134_s8 + $0x100] sm:$0xff] }
 0x28c   :  { %v1356_v33 = vadd.f32 %v1355_v56, %v1349_v54  ;;  %v1573_v56 = vld [vmem:[%s5134_s8 + $0x108] sm:$0xff] }
 0x28e   :  { %1357 = vadd.xlane.f32.xlu0 %v1356_v33 }
 0x293   :  { %63 = vperm.xlu1 %3183, %v59_v32  }
 0x2a4   :  { %68 = vperm.xlu0 %3182, %v60_v23  }
 0x2ba   :  { %v1204_v49 = vpop.f32.mrb[4].mxu1 }
 0x2bb   :  { %v1206_v29 = vpop.f32.mrb[5].mxu1 }
 0x2be   :  { %v3940_v3 = vpop.f32.mrb[6].mxu1 }
 0x2bf   :  { %v3942_v28 = vpop.f32.mrb[7].mxu1 }
 0x30f   :  { %v1354_v57 = vpop.xlane.xlu0 %1353  ;;  %v626_v11 = vpop.xlane.xlu1 %625 }
 0x310   :  { %v1359_v61 = vmul.f32 0.0069444445, %v1354_v57  ;;  %v631_v44 = vmul.f32 0.0069444445, %v626_v11 }
 0x312   :  { %v1361_v62 = vadd.f32 0.01, %v1359_v61  ;;  %v633_v6 = vadd.f32 0.01, %v631_v44  ;;  %v2933_v61 = vpack.c.bf16 %v1573_v56, %v1572_v55  ;;  %v1576_v55 = vld [vmem:[%s5134_s8 + $0x120] sm:$0xff]  ;;  %v1577_v56 = vld [vmem:[%s5134_s8 + $0x128] sm:$0xff] }
 0x313   :  { %v64_v16 = vpop.permute.xlu1 %63 }
 0x314   :  { %3187 = vrsqrt.f32 %v1361_v62  ;;  %v461_v12 = vadd.f32 %v3900_v8, %v64_v16  ;;  %v1205_v22 = vadd.f32 %v1204_v49, %v64_v16  ;;  %v1207_v24 = vadd.f32 %v1206_v29, %v64_v16 }
 0x315   :  { %3189 = vrsqrt.f32 %v633_v6  ;;  %v463_v19 = vadd.f32 %v3910_v15, %v64_v16  ;;  %v3957_v8 = vsub.s32 %v654_v39, %v3852_v17  ;;  %v1588_v15 = vld [vmem:[%s5134_s8 + $0x180] sm:$0xff]  ;;  %v1542_v39 = vld [vmem:[%s5134_s8 + $0x10] sm:$0xff] }
 0x316   :  { %v2931_v29 = vpack.c.bf16 %v1589_v52, %v1588_v15  ;;  %v1593_v15 = vld [vmem:[%s5134_s8 + $0x1a8] sm:$0xff] }
 0x317   :  { %v630_v63 = vpop.xlane.xlu0 %629 }
 0x318   :  { %v632_v35 = vmul.f32 0.0069444445, %v630_v63  ;;  %2932 = vmatprep.subr.bf16.mxu1 %v2931_v29 }
 0x319   :  { %2934 = vmatpush3.bf16.msra.mxu1 %v2933_v61  ;;  %v1579_v61 = vld [vmem:[%s5134_s8 + $0x138] sm:$0xff] }
 0x31a   :  { %v634_v36 = vadd.f32 0.01, %v632_v35 }
 0x31b   :  { %v1358_v9 = vpop.xlane.xlu0 %1357 }
 0x31c   :  { %3191 = vrsqrt.f32 %v634_v36  ;;  %v1360_v10 = vmul.f32 0.0069444445, %v1358_v9 }
 0x31e   :  { %v3188_v13 = vpop.eup %3187  ;;  %v1362_v18 = vadd.f32 0.01, %v1360_v10  ;;  %v1558_v10 = vld [vmem:[%s5134_s8 + $0x90] sm:$0xff] }
 0x31f   :  { %v3190_v21 = vpop.eup %3189  ;;  %v1365_v25 = vmul.f32 %v3188_v13, %v3896_v1  ;;  %v1366_v20 = vmul.f32 %v3188_v13, %v3898_v2  ;;  %v1540_v1 = vld [vmem:[%s5134_s8] sm:$0xff] }
 0x320   :  { %v637_v31 = vmul.f32 %v3190_v21, %v3892_v0  ;;  %v638_v41 = vmul.f32 %v3190_v21, %v3894_v42  ;;  %3193 = vrsqrt.f32 %v1362_v18  ;;  %v1541_v0 = vld [vmem:[%s5134_s8 + $0x8] sm:$0xff] }
 0x321   :  { %v1369_v34 = vadd.f32 %v1365_v25, %v1205_v22  ;;  %v1370_v45 = vadd.f32 %v1366_v20, %v1207_v24  ;;  %v2901_v49 = vpack.c.bf16 %v1541_v0, %v1540_v1  ;;  %v1590_v24 = vld [vmem:[%s5134_s8 + $0x190] sm:$0xff]  ;;  %v1591_v25 = vld [vmem:[%s5134_s8 + $0x198] sm:$0xff]  ;;  %v1544_v0 = vld [vmem:[%s5134_s8 + $0x20] sm:$0xff] }
 0x322   :  { %v641_v46 = vadd.f32 %v637_v31, %v461_v12  ;;  %v642_v47 = vadd.f32 %v638_v41, %v463_v19  ;;  %v1543_v12 = vld [vmem:[%s5134_s8 + $0x18] sm:$0xff]  ;;  %v1574_v19 = vld [vmem:[%s5134_s8 + $0x110] sm:$0xff]  ;;  %v2935_v1 = vpack.c.bf16 %v1591_v25, %v1590_v24 }
 0x323   :  { %v1373_v51 = vmax.f32 %v1369_v34, 0.0  ;;  %v1374_v30 = vmax.f32 %v1370_v45, 0.0  ;;  %v69_v37 = vpop.permute.xlu0 %68  ;;  %2902 = vmatpush3.bf16.msra.mxu0 %v2901_v49  ;;  %v2905_v45 = vpack.c.bf16 %v1543_v12, %v1542_v39  ;;  %v1547_v49 = vld [vmem:[%s5134_s8 + $0x38] sm:$0xff]  ;;  %v1550_v25 = vld [vmem:[%s5134_s8 + $0x50] sm:$0xff] }
 0x324   :  { %v645_v42 = vmax.f32 %v641_v46, 0.0  ;;  %v646_v2 = vmax.f32 %v642_v47, 0.0  ;;  %v467_v54 = vadd.f32 %v466_v4, %v69_v37  ;;  %v469_v60 = vadd.f32 %v3935_v40, %v69_v37  ;;  %v1575_v46 = vld [vmem:[%s5134_s8 + $0x118] sm:$0xff]  ;;  %v1560_v47 = vld [vmem:[%s5134_s8 + $0xa0] sm:$0xff]  ;;  %2936 = vmatprep.subr.bf16.mxu1 %v2935_v1 }
 0x325   :  { %v1379_v53 = vcombine.low %v1373_v51, %v1374_v30  ;;  %v3971_v27 = vcombine.high %v1373_v51, %v1374_v30  ;;  %v1213_v40 = vadd.f32 %v3942_v28, %v69_v37  ;;  %v1561_v51 = vld [vmem:[%s5134_s8 + $0xa8] sm:$0xff]  ;;  %v1600_v1 = vld [vmem:[%s5134_s8 + $0x1e0] sm:$0xff] }
 0x326   :  { %v3192_v33 = vpop.eup %3191  ;;  %v651_v32 = vcombine.low %v645_v42, %v646_v2  ;;  %v713_v23 = vcombine.high %v645_v42, %v646_v2  ;;  %v1545_v42 = vld [vmem:[%s5134_s8 + $0x28] sm:$0xff]  ;;  %v1592_v2 = vld [vmem:[%s5134_s8 + $0x1a0] sm:$0xff] }
 0x327   :  { %v3980_v58 = vrot.slane %v1379_v53, %v3957_v8  ;;  %v639_v59 = vmul.f32 %v3192_v33, %v3914_v43  ;;  %v640_v4 = vmul.f32 %v3192_v33, %v3916_v26  ;;  %v1211_v26 = vadd.f32 %v3940_v3, %v69_v37  ;;  %v1562_v33 = vld [vmem:[%s5134_s8 + $0xb0] sm:$0xff] }
 0x328   :  { %v658_v57 = vrot.slane %v651_v32, %v3957_v8  ;;  %v720_v13 = vrot.slane %v713_v23, %v3957_v8  ;;  %v2937_v53 = vpack.c.bf16 %v1575_v46, %v1574_v19  ;;  %v1563_v32 = vld [vmem:[%s5134_s8 + $0xb8] sm:$0xff]  ;;  %v1546_v23 = vld [vmem:[%s5134_s8 + $0x30] sm:$0xff]  ;;  %v1435_v39 = vrot.slane %v3971_v27, %v3957_v8  ;;  %v1568_v19 = vld [vmem:[%s5134_s8 + $0xe0] sm:$0xff] }
 0x329   :  { %v643_v44 = vadd.f32 %v639_v59, %v467_v54  ;;  %v644_v62 = vadd.f32 %v640_v4, %v469_v60  ;;  %v3993_v6 = vrot.slane %v3980_v58, %v3957_v8  ;;  %v1397_v31 = vcombine.high %v3980_v58, %v3980_v58  ;;  %v1594_v4 = vld [vmem:[%s5134_s8 + $0x1b0] sm:$0xff]  ;;  %v1595_v60 = vld [vmem:[%s5134_s8 + $0x1b8] sm:$0xff] }
 0x32a   :  { %v3194_v43 = vpop.eup %3193  ;;  %v672_v63 = vcombine.high %v658_v57, %v658_v57  ;;  %v665_v35 = vrot.slane %v658_v57, %v3957_v8  ;;  %v727_v30 = vrot.slane %v720_v13, %v3957_v8  ;;  %v739_v37 = vcombine.high %v720_v13, %v720_v13  ;;  %2938 = vmatpush3.bf16.msra.mxu1 %v2937_v53  ;;  %v1578_v57 = vld [vmem:[%s5134_s8 + $0x130] sm:$0xff]  ;;  %v1551_v27 = vld [vmem:[%s5134_s8 + $0x58] sm:$0xff] }
 0x32b   :  { %v647_v38 = vmax.f32 %v643_v44, 0.0  ;;  %v648_v5 = vmax.f32 %v644_v62, 0.0  ;;  %v1367_v36 = vmul.f32 %v3194_v43, %v3922_v48  ;;  %v1368_v16 = vmul.f32 %v3194_v43, %v3924_v50  ;;  %1396 = vst.msk [vmem:[#allocation3 + $0x1] ss:$2 sm:$0x3] %vm3987_vm12, %v3993_v6  ;;  %v1559_v48 = vld [vmem:[%s5134_s8 + $0x98] sm:$0xff] }
 0x32c   :  { %v679_v9 = vrot.slane %v672_v63, %v3957_v8  ;;  %671 = vst.msk [vmem:[#allocation3] ss:$2 sm:$0x3] %vm3987_vm12, %v665_v35  ;;  %v690_v20 = vcombine.high %v665_v35, %v665_v35  ;;  %v2903_v41 = vpack.c.bf16 %v1559_v48, %v1558_v10  ;;  %v1404_v52 = vrot.slane %v1397_v31, %v3957_v8  ;;  %v1564_v44 = vld [vmem:[%s5134_s8 + $0xc0] sm:$0xff]  ;;  %v1565_v62 = vld [vmem:[%s5134_s8 + $0xc8] sm:$0xff] }
 0x32d   :  { %v1371_v3 = vadd.f32 %v1367_v36, %v1211_v26  ;;  %v1372_v28 = vadd.f32 %v1368_v16, %v1213_v40  ;;  %v4020_v22 = vcombine.low %v647_v38, %v648_v5  ;;  %v2907_v54 = vpack.c.bf16 %v1561_v51, %v1560_v47  ;;  %v1596_v40 = vld [vmem:[%s5134_s8 + $0x1c0] sm:$0xff]  ;;  %v1597_v63 = vld [vmem:[%s5134_s8 + $0x1c8] sm:$0xff]  ;;  %v1582_v47 = vld [vmem:[%s5134_s8 + $0x150] sm:$0xff] }
 0x32e   :  { %680 = vrot.lane.b32.xlu1 %v679_v9, %s3230_s4  ;;  %v702_v50 = vcombine.high %v679_v9, %v679_v9  ;;  %2904 = vmatprep.subr.bf16.mxu0 %v2903_v41  ;;  %v746_v29 = vrot.slane %v739_v37, %v3957_v8  ;;  %v2909_v58 = vpack.c.bf16 %v1545_v42, %v1544_v0  ;;  %v1548_v38 = vld [vmem:[%s5134_s8 + $0x40] sm:$0xff]  ;;  %v1549_v5 = vld [vmem:[%s5134_s8 + $0x48] sm:$0xff]  ;;  %vm5143_vm12 = vcmask 195584  }
 0x32f   :  { %v1375_v18 = vmax.f32 %v1371_v3, 0.0  ;;  %v1376_v21 = vmax.f32 %v1372_v28, 0.0  ;;  %2906 = vmatpush3.bf16.msra.mxu0 %v2905_v45  ;;  %v2939_v59 = vpack.c.bf16 %v1593_v15, %v1592_v2  ;;  %v1412_v11 = vcombine.high %v3993_v6, %v3993_v6  ;;  %v1566_v3 = vld [vmem:[%s5134_s8 + $0xd0] sm:$0xff]  ;;  %v1567_v28 = vld [vmem:[%s5134_s8 + $0xd8] sm:$0xff]  ;;  %v1580_v48 = vld [vmem:[%s5134_s8 + $0x140] sm:$0xff] }
 0x330   :  { %703 = vrot.lane.b32.xlu0 %v702_v50, %s3223_s25  ;;  %2908 = vmatprep.subr.bf16.mxu0 %v2907_v54  ;;  %v2941_v43 = vpack.c.bf16 %v1577_v56, %v1576_v55  ;;  %v2911_v26 = vpack.c.bf16 %v1563_v32, %v1562_v33  ;;  %v2913_v6 = vpack.c.bf16 %v1547_v49, %v1546_v23  ;;  %v1581_v50 = vld [vmem:[%s5134_s8 + $0x148] sm:$0xff]  ;;  %v1552_v2 = vld [vmem:[%s5134_s8 + $0x60] sm:$0xff]  ;;  %v1570_v55 = vld [vmem:[%s5134_s8 + $0xf0] sm:$0xff] }
 0x331   :  { %v4034_v34 = vcombine.low %v1375_v18, %v1376_v21  ;;  %2940 = vmatprep.subr.bf16.mxu1 %v2939_v59  ;;  %v2943_v35 = vpack.c.bf16 %v1595_v60, %v1594_v4  ;;  %v758_v36 = vcombine.high %v727_v30, %v727_v30  ;;  %v2945_v16 = vpack.c.bf16 %v1579_v61, %v1578_v57  ;;  %v1598_v18 = vld [vmem:[%s5134_s8 + $0x1d0] sm:$0xff]  ;;  %v1599_v21 = vld [vmem:[%s5134_s8 + $0x1d8] sm:$0xff]  ;;  %v1569_v45 = vld [vmem:[%s5134_s8 + $0xe8] sm:$0xff] }
 0x332   :  { %691 = vrot.lane.b32.xlu1 %v690_v20, %s3231_s14  ;;  %2942 = vmatpush3.bf16.msra.mxu1 %v2941_v43  ;;  %v2915_v9 = vpack.c.bf16 %v1565_v62, %v1564_v44  ;;  %v2947_v10 = vpack.c.bf16 %v1597_v63, %v1596_v40  ;;  %v1420_v13 = vcombine.high %v1404_v52, %v1404_v52  ;;  %v1601_v0 = vld [vmem:[%s5134_s8 + $0x1e8] sm:$0xff]  ;;  %v1571_v56 = vld [vmem:[%s5134_s8 + $0xf8] sm:$0xff]  ;;  %v1584_v32 = vld [vmem:[%s5134_s8 + $0x160] sm:$0xff] }
 0x333   :  { %2910 = vmatpush3.bf16.msra.mxu0 %v2909_v58  ;;  %2944 = vmatprep.subr.bf16.mxu1 %v2943_v35  ;;  %v2917_v12 = vpack.c.bf16 %v1549_v5, %v1548_v38  ;;  %v2919_v24 = vpack.c.bf16 %v1567_v28, %v1566_v3  ;;  %v769_v20 = vcombine.high %v746_v29, %v746_v29  ;;  %v1553_v15 = vld [vmem:[%s5134_s8 + $0x68] sm:$0xff]  ;;  %v1602_v58 = vld [vmem:[%s5134_s8 + $0x1f0] sm:$0xff]  ;;  %v1603_v59 = vld [vmem:[%s5134_s8 + $0x1f8] sm:$0xff] }
 0x334   :  { %728 = vrot.lane.b32.xlu0 %v727_v30, %s3232_s21  ;;  %2912 = vmatprep.subr.bf16.mxu0 %v2911_v26  ;;  %v790_v31 = vrot.slane %v4020_v22, %v3957_v8  ;;  %v2949_v41 = vpack.c.bf16 %v1581_v50, %v1580_v48  ;;  %v2951_v46 = vpack.c.bf16 %v1599_v21, %v1598_v18  ;;  %v1583_v22 = vld [vmem:[%s5134_s8 + $0x158] sm:$0xff]  ;;  %v1585_v23 = vld [vmem:[%s5134_s8 + $0x168] sm:$0xff]  ;;  %v1554_v60 = vld [vmem:[%s5134_s8 + $0x70] sm:$0xff] }
 0x335   :  { %v1442_v51 = vrot.slane %v1435_v39, %v3957_v8  ;;  %v1450_v30 = vcombine.high %v1435_v39, %v1435_v39  ;;  %v2921_v37 = vpack.c.bf16 %v1551_v27, %v1550_v25  ;;  %v2923_v42 = vpack.c.bf16 %v1569_v45, %v1568_v19  ;;  %v1555_v57 = vld [vmem:[%s5134_s8 + $0x78] sm:$0xff]  ;;  %v1620_v44 = vld [vmem:[%s5134_s8 + $0x280] sm:$0xff]  ;;  %v1621_v62 = vld [vmem:[%s5134_s8 + $0x288] sm:$0xff] }
 0x336   :  { %1405 = vrot.lane.b32.xlu1 %v1404_v52, %s3230_s4  ;;  %2946 = vmatpush3.bf16.msra.mxu1 %v2945_v16  ;;  %v797_v52 = vrot.slane %v790_v31, %v3957_v8  ;;  %v809_v53 = vcombine.high %v790_v31, %v790_v31  ;;  %v2953_v54 = vpack.c.bf16 %v1583_v22, %v1582_v47  ;;  %v1586_v26 = vld [vmem:[%s5134_s8 + $0x170] sm:$0xff]  ;;  %v1652_v35 = vld [vmem:[%s5134_s8 + $0x380] sm:$0xff]  ;;  %v1653_v38 = vld [vmem:[%s5134_s8 + $0x388] sm:$0xff] }
 0x337   :  { %2914 = vmatpush3.bf16.msra.mxu0 %v2913_v6  ;;  %2948 = vmatprep.subr.bf16.mxu1 %v2947_v10  ;;  %v2955_v33 = vpack.c.bf16 %v1601_v0, %v1600_v1  ;;  %v1457_v49 = vrot.slane %v1450_v30, %v3957_v8  ;;  %v2927_v4 = vpack.c.bf16 %v1571_v56, %v1570_v55  ;;  %v1587_v6 = vld [vmem:[%s5134_s8 + $0x178] sm:$0xff]  ;;  %v1636_v47 = vld [vmem:[%s5134_s8 + $0x300] sm:$0xff]  ;;  %v1646_v25 = vld [vmem:[%s5134_s8 + $0x350] sm:$0xff] }
 0x338   :  { %747 = vrot.lane.b32.xlu0 %v746_v29, %s3233_s10  ;;  %2916 = vmatprep.subr.bf16.mxu0 %v2915_v9  ;;  %v2925_v29 = vpack.c.bf16 %v1553_v15, %v1552_v2  ;;  %v2957_v61 = vpack.c.bf16 %v1585_v23, %v1584_v32  ;;  %v2959_v43 = vpack.c.bf16 %v1603_v59, %v1602_v58  ;;  %v1625_v32 = vld [vmem:[%s5134_s8 + $0x2a8] sm:$0xff]  ;;  %v1647_v27 = vld [vmem:[%s5134_s8 + $0x358] sm:$0xff] }
 0x339   :  { %v1465_v40 = vcombine.high %v1442_v51, %v1442_v51  ;;  %v2929_v63 = vpack.c.bf16 %v1555_v57, %v1554_v60  ;;  %v2963_v5 = vpack.c.bf16 %v1621_v62, %v1620_v44  ;;  %v2961_v16 = vpack.c.bf16 %v1587_v6, %v1586_v26  ;;  %v1640_v57 = vld [vmem:[%s5134_s8 + $0x320] sm:$0xff] }
 0x33a   :  { %1413 = vrot.lane.b32.xlu1 %v1412_v11, %s3231_s14  ;;  %2950 = vmatpush3.bf16.msra.mxu1 %v2949_v41  ;;  %v816_v11 = vrot.slane %v809_v53, %v3957_v8  ;;  %v2995_v9 = vpack.c.bf16 %v1653_v38, %v1652_v35  ;;  %v1473_v3 = vcombine.high %v1457_v49, %v1457_v49  ;;  %v1622_v41 = vld [vmem:[%s5134_s8 + $0x290] sm:$0xff] }
 0x33b   :  { %2918 = vmatpush3.bf16.msra.mxu0 %v2917_v12  ;;  %2952 = vmatprep.subr.bf16.mxu1 %v2951_v46  ;;  %v1490_v28 = vrot.slane %v4034_v34, %v3957_v8 }
 0x33c   :  { %759 = vrot.lane.b32.xlu0 %v758_v36, %s3226_s28  ;;  %2920 = vmatprep.subr.bf16.mxu0 %v2919_v24  ;;  %v828_v36 = vcombine.high %v797_v52, %v797_v52  ;;  %v840_v10 = vcombine.high %v816_v11, %v816_v11 }
 0x33d   :  { %v1497_v48 = vrot.slane %v1490_v28, %v3957_v8  ;;  %v1505_v50 = vcombine.high %v1490_v28, %v1490_v28 }
 0x33e   :  { %1421 = vrot.lane.b32.xlu1 %v1420_v13, %s3223_s25  ;;  %2954 = vmatpush3.bf16.msra.mxu1 %v2953_v54 }
 0x33f   :  { %2922 = vmatpush3.bf16.msra.mxu0 %v2921_v37  ;;  %2956 = vmatprep.subr.bf16.mxu1 %v2955_v33  ;;  %v1512_v13 = vrot.slane %v1505_v50, %v3957_v8  ;;  %v1520_v39 = vcombine.high %v1497_v48, %v1497_v48  ;;  %v1624_v33 = vld [vmem:[%s5134_s8 + $0x2a0] sm:$0xff] }
 0x340   :  { %770 = vrot.lane.b32.xlu0 %v769_v20, %s3234_s5  ;;  %2924 = vmatprep.subr.bf16.mxu0 %v2923_v42  ;;  %v1655_v42 = vld [vmem:[%s5134_s8 + $0x398] sm:$0xff] }
 0x341   :  { %v1528_v34 = vcombine.high %v1512_v13, %v1512_v13 }
 0x342   :  { %1443 = vrot.lane.b32.xlu1 %v1442_v51, %s3232_s21  ;;  %2958 = vmatpush3.bf16.msra.mxu1 %v2957_v61 }
 0x343   :  { %2926 = vmatpush3.bf16.msra.mxu0 %v2925_v29  ;;  %2960 = vmatprep.subr.bf16.mxu1 %v2959_v43 }
 0x344   :  { %798 = vrot.lane.b32.xlu0 %v797_v52, %s3235_s6  ;;  %2928 = vmatprep.subr.bf16.mxu0 %v2927_v4 }
 0x346   :  { %1458 = vrot.lane.b32.xlu1 %v1457_v49, %s3233_s10  ;;  %2962 = vmatpush3.bf16.msra.mxu1 %v2961_v16 }
 0x347   :  { %2930 = vmatpush3.bf16.msra.mxu0 %v2929_v63  ;;  %2996 = vmatprep.subr.bf16.mxu1 %v2995_v9 }
 0x348   :  { %817 = vrot.lane.b32.xlu0 %v816_v11, %s3236_s15  ;;  %2964 = vmatprep.subr.bf16.mxu0 %v2963_v5  ;;  %v3239_v11 = vmov 1983009808  }
 0x349   :  { %v1801_v61 = vunpack.c.l.s4 %v3239_v11  ;;  %v1639_v11 = vld [vmem:[%s5134_s8 + $0x318] sm:$0xff] }
 0x34a   :  { %1466 = vrot.lane.b32.xlu1 %v1465_v40, %s3226_s28 }
 0x34b   :  { %v1802_v38 = vunpack.c.0.s8 %v1801_v61 }
 0x34c   :  { %829 = vrot.lane.b32.xlu0 %v828_v36, %s3237_s18 }
 0x34d   :  { %v4417_v50 = vsub.s32 %v1802_v38, %v3852_v17  ;;  %v1608_v38 = vld [vmem:[%s5134_s8 + $0x220] sm:$0xff] }
 0x34e   :  { %1474 = vrot.lane.b32.xlu1 %v1473_v3, %s3234_s5 }
 0x350   :  { %841 = vrot.lane.b32.xlu0 %v840_v10, %s3238_s19 }
 0x352   :  { %1498 = vrot.lane.b32.xlu1 %v1497_v48, %s3235_s6 }
 0x356   :  { %1513 = vrot.lane.b32.xlu1 %v1512_v13, %s3236_s15 }
 0x35a   :  { %1521 = vrot.lane.b32.xlu1 %v1520_v39, %s3237_s18 }
 0x35e   :  { %1529 = vrot.lane.b32.xlu1 %v1528_v34, %s3238_s19 }
 0x3a0   :  { %v681_v21 = vpop.permute.xlu1 %680 }
 0x3a1   :  { %v682_v8 = vrot.slane %v681_v21, 7 }
 0x3a2   :  { %v704_v24 = vpop.permute.xlu0 %703 }
 0x3a3   :  { %v683_v20 = vsel %vm191_vm3, %v682_v8, %v681_v21  ;;  %v705_v19 = vrot.slane %v704_v24, 7  ;;  %v1604_v21 = vld [vmem:[%s5134_s8 + $0x200] sm:$0xff]  ;;  %v1605_v8 = vld [vmem:[%s5134_s8 + $0x208] sm:$0xff] }
 0x3a4   :  { %689 = vst.msk [vmem:[#allocation3 + $0x2] ss:$2 sm:$0x3] %vm5139_vm15, %v683_v20  ;;  %v692_v45 = vpop.permute.xlu1 %691  ;;  %vm4298_vm15 = vcmp.ge.s32.totalorder %v587_v14, 62 }
 0x3a5   :  { %v693_v22 = vrot.slane %v692_v45, 7  ;;  %v706_v1 = vsel %vm5141_vm7, %v705_v19, %v704_v24  ;;  %vm5145_vm7 = vcmask 506880   ;;  %v1623_v19 = vld [vmem:[%s5134_s8 + $0x298] sm:$0xff] }
 0x3a6   :  { %v729_v51 = vpop.permute.xlu0 %728 }
 0x3a7   :  { %v695_v30 = vsel %vm5140_vm6, %v693_v22, %v692_v45  ;;  %v730_v37 = vrot.slane %v729_v51, 7  ;;  %vm4303_vm6 = vcmp.lt.s32.totalorder %v587_v14, 228  ;;  %v1637_v22 = vld [vmem:[%s5134_s8 + $0x308] sm:$0xff] }
 0x3a8   :  { %701 = vst.msk [vmem:[#allocation3 + $0x4] ss:$2 sm:$0x3] %vm5142_vm10, %v695_v30  ;;  %v1406_v0 = vpop.permute.xlu1 %1405  ;;  %vm5146_vm10 = vmand %vm4298_vm15, %vm4303_vm6 }
 0x3a9   :  { %712 = vst.msk [vmem:[#allocation3 + $0x6] ss:$2 sm:$0x7] %vm5144_vm11, %v706_v1  ;;  %v732_v15 = vsel %vm5143_vm12, %v730_v37, %v729_v51  ;;  %v1407_v52 = vrot.slane %v1406_v0, 7  ;;  %vm5176_vm12 = vmand %vm4229_vm13, %vm4234_vm14  ;;  %vm4329_vm11 = vcmp.ge.s32.totalorder %v587_v14, 100  ;;  %vm5181_vm13 = vcmask 621568  }
 0x3aa   :  { %738 = vst.msk [vmem:[#allocation3 + $0xa] ss:$2 sm:$0x3] %vm5147_vm2, %v732_v15  ;;  %v748_v53 = vpop.permute.xlu0 %747  ;;  %vm4381_vm2 = vcmp.ge.s32.totalorder %v587_v14, 48  ;;  %v2965_v37 = vpack.c.bf16 %v1605_v8, %v1604_v21 }
 0x3ab   :  { %v1408_v54 = vsel %vm191_vm3, %v1407_v52, %v1406_v0  ;;  %v749_v55 = vrot.slane %v748_v53, 7  ;;  %vm4334_vm3 = vcmp.lt.s32.totalorder %v587_v14, 266  ;;  %v1654_v0 = vld [vmem:[%s5134_s8 + $0x390] sm:$0xff]  ;;  %v2967_v52 = vpack.c.bf16 %v1623_v19, %v1622_v41 }
 0x3ac   :  { %1411 = vst.msk [vmem:[#allocation3 + $0x3] ss:$2 sm:$0x3] %vm5176_vm12, %v1408_v54  ;;  %v1414_v56 = vpop.permute.xlu1 %1413  ;;  %vm5148_vm14 = vmand %vm4329_vm11, %vm4334_vm3  ;;  %v1607_v54 = vld [vmem:[%s5134_s8 + $0x218] sm:$0xff] }
 0x3ad   :  { %v751_v23 = vsel %vm5145_vm7, %v749_v55, %v748_v53  ;;  %v1415_v49 = vrot.slane %v1414_v56, 7  ;;  %vm5182_vm12 = vmand %vm4243_vm0, %vm4248_vm1  ;;  %vm4355_vm7 = vcmp.ge.s32.totalorder %v587_v14, 10  ;;  %vm5149_vm0 = vcmask 80896   ;;  %v1606_v53 = vld [vmem:[%s5134_s8 + $0x210] sm:$0xff] }
 0x3ae   :  { %757 = vst.msk [vmem:[#allocation3 + $0xc] ss:$2 sm:$0x3] %vm5146_vm10, %v751_v23  ;;  %v760_v29 = vpop.permute.xlu0 %759  ;;  %vm5187_vm10 = vcmask 818176   ;;  %vm5188_vm1 = vcmask 932864   ;;  %v1649_v23 = vld [vmem:[%s5134_s8 + $0x368] sm:$0xff] }
 0x3af   :  { %v1416_v58 = vsel %vm5181_vm13, %v1415_v49, %v1414_v56  ;;  %v761_v59 = vrot.slane %v760_v29, 7  ;;  %vm4360_vm13 = vcmp.lt.s32.totalorder %v587_v14, 176  ;;  %v1648_v56 = vld [vmem:[%s5134_s8 + $0x360] sm:$0xff] }
 0x3b0   :  { %1419 = vst.msk [vmem:[#allocation3 + $0x5] ss:$2 sm:$0x3] %vm5182_vm12, %v1416_v58  ;;  %v1422_v4 = vpop.permute.xlu1 %1421  ;;  %vm5150_vm12 = vmand %vm4355_vm7, %vm4360_vm13 }
 0x3b1   :  { %v762_v44 = vsel %vm5187_vm10, %v761_v59, %v760_v29  ;;  %v1423_v62 = vrot.slane %v1422_v4, 7  ;;  %vm5189_vm10 = vmand %vm4254_vm4, %vm4259_vm5  ;;  %vm801_vm4 = vcmask 392192   ;;  %vm5194_vm5 = vcmask 195584  }
 0x3b2   :  { %768 = vst.msk [vmem:[#allocation3 + $0xe] ss:$2 sm:$0x7] %vm5148_vm14, %v762_v44  ;;  %v771_v43 = vpop.permute.xlu0 %770  ;;  %vm4402_vm14 = vcmp.ge.s32.totalorder %v587_v14, 86  ;;  %v2997_v29 = vpack.c.bf16 %v1637_v22, %v1636_v47  ;;  %v2969_v44 = vpack.c.bf16 %v1607_v54, %v1606_v53  ;;  %v1629_v47 = vld [vmem:[%s5134_s8 + $0x2c8] sm:$0xff]  ;;  %v1642_v22 = vld [vmem:[%s5134_s8 + $0x330] sm:$0xff] }
 0x3b3   :  { %v1424_v26 = vsel %vm5188_vm1, %v1423_v62, %v1422_v4  ;;  %v772_v6 = vrot.slane %v771_v43, 7  ;;  %vm4386_vm1 = vcmp.lt.s32.totalorder %v587_v14, 214  ;;  %v2999_v4 = vpack.c.bf16 %v1655_v42, %v1654_v0  ;;  %v1656_v62 = vld [vmem:[%s5134_s8 + $0x3a0] sm:$0xff]  ;;  %v1661_v42 = vld [vmem:[%s5134_s8 + $0x3c8] sm:$0xff] }
 0x3b4   :  { %1427 = vst.msk [vmem:[#allocation3 + $0x7] ss:$2 sm:$0x7] %vm5189_vm10, %v1424_v26  ;;  %v1444_v40 = vpop.permute.xlu1 %1443  ;;  %vm5151_vm10 = vmand %vm4381_vm2, %vm4386_vm1  ;;  %v1660_v0 = vld [vmem:[%s5134_s8 + $0x3c0] sm:$0xff]  ;;  %v1613_v53 = vld [vmem:[%s5134_s8 + $0x248] sm:$0xff] }
 0x3b5   :  { %v774_v5 = vsel %vm5149_vm0, %v772_v6, %v771_v43  ;;  %v1445_v36 = vrot.slane %v1444_v40, 7  ;;  %vm4407_vm0 = vcmp.lt.s32.totalorder %v587_v14, 252  ;;  %v1657_v43 = vld [vmem:[%s5134_s8 + $0x3a8] sm:$0xff]  ;;  %v3011_v10 = vpack.c.bf16 %v1661_v42, %v1660_v0  ;;  %v1668_v42 = vld [vmem:[%s5134_s8 + $0x400] sm:$0xff] }
 0x3b6   :  { %780 = vst.msk [vmem:[#allocation3 + $0x12] ss:$2 sm:$0x3] %vm5150_vm12, %v774_v5  ;;  %v799_v16 = vpop.permute.xlu0 %798  ;;  %vm5153_vm12 = vcmask 703488   ;;  %v1609_v5 = vld [vmem:[%s5134_s8 + $0x228] sm:$0xff]  ;;  %v3003_v60 = vpack.c.bf16 %v1657_v43, %v1656_v62  ;;  %v1615_v62 = vld [vmem:[%s5134_s8 + $0x258] sm:$0xff] }
 0x3b7   :  { %v1446_v9 = vsel %vm5194_vm5, %v1445_v36, %v1444_v40  ;;  %v800_v3 = vrot.slane %v799_v16, 7  ;;  %vm5199_vm5 = vmand %vm4269_vm8, %vm4274_vm9  ;;  %vm5200_vm9 = vcmask 506880   ;;  %v2971_v40 = vpack.c.bf16 %v1625_v32, %v1624_v33  ;;  %v1631_v33 = vld [vmem:[%s5134_s8 + $0x2d8] sm:$0xff]  ;;  %v1644_v32 = vld [vmem:[%s5134_s8 + $0x340] sm:$0xff] }
 0x3b8   :  { %1449 = vst.msk [vmem:[#allocation3 + $0xb] ss:$2 sm:$0x3] %vm5199_vm5, %v1446_v9  ;;  %v1459_v48 = vpop.permute.xlu1 %1458  ;;  %vm5152_vm8 = vmand %vm4402_vm14, %vm4407_vm0  ;;  %v1626_v9 = vld [vmem:[%s5134_s8 + $0x2b0] sm:$0xff] }
 0x3b9   :  { %v802_v13 = vsel %vm801_vm4, %v800_v3, %v799_v16  ;;  %v1460_v39 = vrot.slane %v1459_v48, 7  ;;  %vm5201_vm5 = vmand %vm4298_vm15, %vm4303_vm6  ;;  %vm832_vm15 = vcmask 1014784   ;;  %vm5206_vm6 = vcmask 818176   ;;  %v1627_v3 = vld [vmem:[%s5134_s8 + $0x2b8] sm:$0xff] }
 0x3ba   :  { %808 = vst.msk [vmem:[#allocation3 + $0x14] ss:$2 sm:$0x3] %vm5151_vm10, %v802_v13  ;;  %v818_v34 = vpop.permute.xlu0 %817  ;;  %vm4442_vm10 = vcmp.ge.s32.totalorder %v587_v14, 124  ;;  %v2975_v21 = vpack.c.bf16 %v1627_v3, %v1626_v9  ;;  %v1665_v9 = vld [vmem:[%s5134_s8 + $0x3e8] sm:$0xff] }
 0x3bb   :  { %v1461_v12 = vsel %vm5200_vm9, %v1460_v39, %v1459_v48  ;;  %v819_v17 = vrot.slane %v818_v34, 7  ;;  %v1536_v18 = vld [vmem:[#allocation3] sm:$0xff]  ;;  %vm4447_vm9 = vcmp.lt.s32.totalorder %v587_v14, 290  ;;  %v1641_v39 = vld [vmem:[%s5134_s8 + $0x328] sm:$0xff] }
 0x3bc   :  { %1464 = vst.msk [vmem:[#allocation3 + $0xd] ss:$2 sm:$0x3] %vm5201_vm5, %v1461_v12  ;;  %v1467_v24 = vpop.permute.xlu1 %1466  ;;  %v1806_v20 = vrot.slane %v1536_v18, %v4417_v50  ;;  %v1799_v31 = vcombine.high %v1536_v18, %v1536_v18  ;;  %vm837_vm5 = vmand %vm4442_vm10, %vm4447_vm9  ;;  %v1658_v12 = vld [vmem:[%s5134_s8 + $0x3b0] sm:$0xff]  ;;  %v3005_v41 = vpack.c.bf16 %v1641_v39, %v1640_v57  ;;  %v3017_v57 = vpack.c.bf16 %v1647_v27, %v1646_v25  ;;  %v1672_v25 = vld [vmem:[%s5134_s8 + $0x420] sm:$0xff] }
 0x3bd   :  { %v821_v45 = vsel %vm5153_vm12, %v819_v17, %v818_v34  ;;  %v1468_v46 = vrot.slane %v1467_v24, 7  ;;  %vm4499_vm12 = vcmp.lt.s32.totalorder %v587_v14, 200  ;;  %v2973_v34 = vpack.c.bf16 %v1609_v5, %v1608_v38  ;;  %v1659_v17 = vld [vmem:[%s5134_s8 + $0x3b8] sm:$0xff]  ;;  %v1634_v39 = vld [vmem:[%s5134_s8 + $0x2f0] sm:$0xff]  ;;  %v1673_v27 = vld [vmem:[%s5134_s8 + $0x428] sm:$0xff] }
 0x3be   :  { %827 = vst.msk [vmem:[#allocation3 + $0x16] ss:$2 sm:$0x3] %vm5152_vm8, %v821_v45  ;;  %v830_v51 = vpop.permute.xlu0 %829  ;;  %v1814_v30 = vcombine.high %v1806_v20, %v1806_v20  ;;  %v1813_v1 = vrot.slane %v1799_v31, %v4417_v50  ;;  %vm4494_vm8 = vcmp.ge.s32.totalorder %v587_v14, 34  ;;  %v1638_v14 = vld [vmem:[%s5134_s8 + $0x310] sm:$0xff]  ;;  %v3007_v35 = vpack.c.bf16 %v1659_v17, %v1658_v12 }
 0x3bf   :  { %v1469_v2 = vsel %vm5206_vm6, %v1468_v46, %v1467_v24  ;;  %v831_v15 = vrot.slane %v830_v51, 7  ;;  %vm5207_vm6 = vmand %vm4329_vm11, %vm4334_vm3  ;;  %vm844_vm11 = vcmask 277504   ;;  %vm5212_vm3 = vcmask 80896   ;;  %v1610_v24 = vld [vmem:[%s5134_s8 + $0x230] sm:$0xff]  ;;  %v1628_v46 = vld [vmem:[%s5134_s8 + $0x2c0] sm:$0xff] }
 0x3c0   :  { %1472 = vst.msk [vmem:[#allocation3 + $0xf] ss:$2 sm:$0x7] %vm5207_vm6, %v1469_v2  ;;  %v1475_v55 = vpop.permute.xlu1 %1474  ;;  %1949 = vmatprep.mubr.f32.mxu0 %v1814_v30  ;;  %v1815_v49 = vcombine.high %v1813_v1, %v1813_v1  ;;  %vm849_vm6 = vmand %vm4494_vm8, %vm4499_vm12  ;;  %v3001_v16 = vpack.c.bf16 %v1639_v11, %v1638_v14  ;;  %v1663_v14 = vld [vmem:[%s5134_s8 + $0x3d8] sm:$0xff] }
 0x3c1   :  { %v833_v58 = vsel %vm832_vm15, %v831_v15, %v830_v51  ;;  %v1476_v59 = vrot.slane %v1475_v55, 7  ;;  %1950 = vmatmul.mubr.f32.vlgmr.msra.gmra.mrb[16].mxu0 %v1806_v20  ;;  %v1611_v20 = vld [vmem:[%s5134_s8 + $0x238] sm:$0xff]  ;;  %v2979_v15 = vpack.c.bf16 %v1629_v47, %v1628_v46  ;;  %v1685_v46 = vld [vmem:[%s5134_s8 + $0x488] sm:$0xff] }
 0x3c2   :  { %839 = vst.msk [vmem:[#allocation3 + $0x18] ss:$2 sm:$0x7] %vm837_vm5, %v833_v58  ;;  %2966 = vmatpush3.bf16.msra.mxu0 %v2965_v37  ;;  %v842_v61 = vpop.permute.xlu0 %841  ;;  %2019 = vmatprep.mubr.f32.mxu1 %v1815_v49  ;;  %v1643_v51 = vld [vmem:[%s5134_s8 + $0x338] sm:$0xff]  ;;  %v2977_v37 = vpack.c.bf16 %v1611_v20, %v1610_v24  ;;  %v1645_v58 = vld [vmem:[%s5134_s8 + $0x348] sm:$0xff]  ;;  %v1618_v24 = vld [vmem:[%s5134_s8 + $0x270] sm:$0xff] }
 0x3c3   :  { %v1477_v26 = vsel %vm5212_vm3, %v1476_v59, %v1475_v55  ;;  %v843_v6 = vrot.slane %v842_v61, 7  ;;  %2020 = vmatmul.mubr.f32.vlgmr.msra.gmra.mrb[8].mxu1 %v1813_v1  ;;  %2968 = vmatprep.subr.bf16.mxu0 %v2967_v52  ;;  %vm5213_vm3 = vmand %vm4355_vm7, %vm4360_vm13  ;;  %v1612_v52 = vld [vmem:[%s5134_s8 + $0x240] sm:$0xff]  ;;  %v3009_v49 = vpack.c.bf16 %v1643_v51, %v1642_v22  ;;  %v1619_v20 = vld [vmem:[%s5134_s8 + $0x278] sm:$0xff] }
 0x3c4   :  { %1480 = vst.msk [vmem:[#allocation3 + $0x13] ss:$2 sm:$0x3] %vm5213_vm3, %v1477_v26  ;;  %2998 = vmatpush3.bf16.msra.mxu1 %v2997_v29  ;;  %v1499_v36 = vpop.permute.xlu1 %1498  ;;  %vm5214_vm7 = vmand %vm4381_vm2, %vm4386_vm1  ;;  %vm5215_vm2 = vcmask 703488   ;;  %v1630_v29 = vld [vmem:[%s5134_s8 + $0x2d0] sm:$0xff]  ;;  %v2981_v59 = vpack.c.bf16 %v1613_v53, %v1612_v52  ;;  %v3013_v26 = vpack.c.bf16 %v1645_v58, %v1644_v32  ;;  %v2993_v22 = vpack.c.bf16 %v1619_v20, %v1618_v24  ;;  %v1716_v51 = vld [vmem:[%s5134_s8 + $0x580] sm:$0xff] }
 0x3c5   :  { %v845_v48 = vsel %vm844_vm11, %v843_v6, %v842_v61  ;;  %v1500_v13 = vrot.slane %v1499_v36, 7  ;;  %3000 = vmatprep.subr.bf16.mxu1 %v2999_v4  ;;  %vm5216_vm13 = vmand %vm4402_vm14, %vm4407_vm0  ;;  %v1662_v4 = vld [vmem:[%s5134_s8 + $0x3d0] sm:$0xff]  ;;  %v2983_v61 = vpack.c.bf16 %v1631_v33, %v1630_v29  ;;  %v1632_v6 = vld [vmem:[%s5134_s8 + $0x2e0] sm:$0xff]  ;;  %vm1882_vm14 = vcmask 588800  }
 0x3c6   :  { %851 = vst.msk [vmem:[#allocation3 + $0x1c] ss:$2 sm:$0x3] %vm849_vm6, %v845_v48  ;;  %2970 = vmatpush3.bf16.msra.mxu0 %v2969_v44  ;;  %v1614_v44 = vld [vmem:[%s5134_s8 + $0x250] sm:$0xff]  ;;  %v3015_v5 = vpack.c.bf16 %v1663_v14, %v1662_v4  ;;  %v1701_v29 = vld [vmem:[%s5134_s8 + $0x508] sm:$0xff]  ;;  %v1719_v32 = vld [vmem:[%s5134_s8 + $0x598] sm:$0xff] }
 0x3c7   :  { %v1501_v18 = vsel %vm801_vm4, %v1500_v13, %v1499_v36  ;;  %2972 = vmatprep.subr.bf16.mxu0 %v2971_v40  ;;  %v1537_v8 = vld [vmem:[#allocation3 + $0x8] sm:$0xff]  ;;  %v2985_v36 = vpack.c.bf16 %v1615_v62, %v1614_v44  ;;  %v1616_v13 = vld [vmem:[%s5134_s8 + $0x260] sm:$0xff]  ;;  %v1686_v53 = vld [vmem:[%s5134_s8 + $0x490] sm:$0xff] }
 0x3c8   :  { %1504 = vst.msk [vmem:[#allocation3 + $0x15] ss:$2 sm:$0x3] %vm5214_vm7, %v1501_v18  ;;  %3002 = vmatpush3.bf16.msra.mxu1 %v3001_v16  ;;  %v1514_v31 = vpop.permute.xlu1 %1513  ;;  %v4580_v19 = vrot.slane %v1537_v8, %v4417_v50  ;;  %v1816_v45 = vcombine.high %v1537_v8, %v1537_v8  ;;  %v1633_v40 = vld [vmem:[%s5134_s8 + $0x2e8] sm:$0xff]  ;;  %v1664_v16 = vld [vmem:[%s5134_s8 + $0x3e0] sm:$0xff]  ;;  %v1666_v18 = vld [vmem:[%s5134_s8 + $0x3f0] sm:$0xff] }
 0x3c9   :  { %v1515_v63 = vrot.slane %v1514_v31, 7  ;;  %3004 = vmatprep.subr.bf16.mxu1 %v3003_v60  ;;  %v2987_v48 = vpack.c.bf16 %v1633_v40, %v1632_v6  ;;  %v1617_v60 = vld [vmem:[%s5134_s8 + $0x268] sm:$0xff]  ;;  %v3019_v12 = vpack.c.bf16 %v1665_v9, %v1664_v16  ;;  %v1671_v4 = vld [vmem:[%s5134_s8 + $0x418] sm:$0xff]  ;;  %v1690_v16 = vld [vmem:[%s5134_s8 + $0x4b0] sm:$0xff] }
 0x3ca   :  { %2974 = vmatpush3.bf16.msra.mxu0 %v2973_v34  ;;  %v1831_v30 = vcombine.high %v4580_v19, %v4580_v19  ;;  %v4597_v1 = vrot.slane %v1816_v45, %v4417_v50  ;;  %v1635_v34 = vld [vmem:[%s5134_s8 + $0x2f8] sm:$0xff]  ;;  %v2989_v17 = vpack.c.bf16 %v1617_v60, %v1616_v13  ;;  %v1684_v45 = vld [vmem:[%s5134_s8 + $0x480] sm:$0xff]  ;;  %v1689_v44 = vld [vmem:[%s5134_s8 + $0x4a8] sm:$0xff]  ;;  %v3037_v13 = vpack.c.bf16 %v1673_v27, %v1672_v25 }
 0x3cb   :  { %v1516_v2 = vsel %vm5215_vm2, %v1515_v63, %v1514_v31  ;;  %2976 = vmatprep.subr.bf16.mxu0 %v2975_v21  ;;  %v1667_v21 = vld [vmem:[%s5134_s8 + $0x3f8] sm:$0xff]  ;;  %v2991_v8 = vpack.c.bf16 %v1635_v34, %v1634_v39  ;;  %v1650_v63 = vld [vmem:[%s5134_s8 + $0x370] sm:$0xff]  ;;  %v3027_v0 = vpack.c.bf16 %v1685_v46, %v1684_v45  ;;  %v1724_v20 = vld [vmem:[%s5134_s8 + $0x5c0] sm:$0xff] }
 0x3cc   :  { %1519 = vst.msk [vmem:[#allocation3 + $0x17] ss:$2 sm:$0x3] %vm5216_vm13, %v1516_v2  ;;  %3006 = vmatpush3.bf16.msra.mxu1 %v3005_v41  ;;  %v1522_v54 = vpop.permute.xlu1 %1521  ;;  %2089 = vmatprep.mubr.f32.mxu0 %v1831_v30  ;;  %v1832_v55 = vcombine.high %v4597_v1, %v4597_v1  ;;  %v3021_v41 = vpack.c.bf16 %v1649_v23, %v1648_v56  ;;  %v1717_v30 = vld [vmem:[%s5134_s8 + $0x588] sm:$0xff]  ;;  %v1722_v60 = vld [vmem:[%s5134_s8 + $0x5b0] sm:$0xff]  ;;  %v1692_v23 = vld [vmem:[%s5134_s8 + $0x4c0] sm:$0xff] }
 0x3cd   :  { %v1523_v28 = vrot.slane %v1522_v54, 7  ;;  %3008 = vmatprep.subr.bf16.mxu1 %v3007_v35  ;;  %v3023_v47 = vpack.c.bf16 %v1667_v21, %v1666_v18  ;;  %v1651_v35 = vld [vmem:[%s5134_s8 + $0x378] sm:$0xff]  ;;  %v1669_v2 = vld [vmem:[%s5134_s8 + $0x408] sm:$0xff]  ;;  %v1674_v34 = vld [vmem:[%s5134_s8 + $0x430] sm:$0xff] }
 0x3ce   :  { %2978 = vmatpush3.bf16.msra.mxu0 %v2977_v37  ;;  %2159 = vmatprep.mubr.f32.mxu1 %v1832_v55  ;;  %v3059_v55 = vpack.c.bf16 %v1717_v30, %v1716_v51  ;;  %v3029_v33 = vpack.c.bf16 %v1669_v2, %v1668_v42  ;;  %v1706_v21 = vld [vmem:[%s5134_s8 + $0x530] sm:$0xff]  ;;  %v1676_v45 = vld [vmem:[%s5134_s8 + $0x440] sm:$0xff]  ;;  %v1677_v46 = vld [vmem:[%s5134_s8 + $0x448] sm:$0xff] }
 0x3cf   :  { %v1524_v11 = vsel %vm832_vm15, %v1523_v28, %v1522_v54  ;;  %2980 = vmatprep.subr.bf16.mxu0 %v2979_v15  ;;  %v3025_v15 = vpack.c.bf16 %v1651_v35, %v1650_v63  ;;  %v1687_v54 = vld [vmem:[%s5134_s8 + $0x498] sm:$0xff]  ;;  %v1694_v63 = vld [vmem:[%s5134_s8 + $0x4d0] sm:$0xff]  ;;  %v1708_v51 = vld [vmem:[%s5134_s8 + $0x540] sm:$0xff] }
 0x3d0   :  { %1527 = vst.msk [vmem:[#allocation3 + $0x19] ss:$2 sm:$0x7] %vm837_vm5, %v1524_v11  ;;  %3010 = vmatpush3.bf16.msra.mxu1 %v3009_v49  ;;  %v1530_v43 = vpop.permute.xlu1 %1529  ;;  %v1700_v49 = vld [vmem:[%s5134_s8 + $0x500] sm:$0xff]  ;;  %v3031_v58 = vpack.c.bf16 %v1687_v54, %v1686_v53  ;;  %v1695_v35 = vld [vmem:[%s5134_s8 + $0x4d8] sm:$0xff]  ;;  %v1709_v30 = vld [vmem:[%s5134_s8 + $0x548] sm:$0xff] }
 0x3d1   :  { %v1531_v38 = vrot.slane %v1530_v43, 7  ;;  %3012 = vmatprep.subr.bf16.mxu1 %v3011_v10  ;;  %v1718_v10 = vld [vmem:[%s5134_s8 + $0x590] sm:$0xff]  ;;  %v3061_v11 = vpack.c.bf16 %v1701_v29, %v1700_v49  ;;  %v1727_v42 = vld [vmem:[%s5134_s8 + $0x5d8] sm:$0xff]  ;;  %v3047_v2 = vpack.c.bf16 %v1695_v35, %v1694_v63  ;;  %v3077_v54 = vpack.c.bf16 %v1709_v30, %v1708_v51  ;;  %v1697_v49 = vld [vmem:[%s5134_s8 + $0x4e8] sm:$0xff] }
 0x3d2   :  { %2982 = vmatpush3.bf16.msra.mxu0 %v2981_v59  ;;  %v1670_v59 = vld [vmem:[%s5134_s8 + $0x410] sm:$0xff]  ;;  %v3063_v62 = vpack.c.bf16 %v1719_v32, %v1718_v10  ;;  %v1679_v53 = vld [vmem:[%s5134_s8 + $0x458] sm:$0xff]  ;;  %v1753_v63 = vld [vmem:[%s5134_s8 + $0x6a8] sm:$0xff]  ;;  %v3240_v35 = vmov 0.0|0.0  }
 0x3d3   :  { %v1532_v3 = vsel %vm844_vm11, %v1531_v38, %v1530_v43  ;;  %2984 = vmatprep.subr.bf16.mxu0 %v2983_v61  ;;  %v1538_v31 = vld [vmem:[#allocation3 + $0x10] sm:$0xff]  ;;  %v1688_v61 = vld [vmem:[%s5134_s8 + $0x4a0] sm:$0xff]  ;;  %v3033_v40 = vpack.c.bf16 %v1671_v4, %v1670_v59  ;;  %v1721_v38 = vld [vmem:[%s5134_s8 + $0x5a8] sm:$0xff] }
 0x3d4   :  { %1535 = vst.msk [vmem:[#allocation3 + $0x1d] ss:$2 sm:$0x3] %vm849_vm6, %v1532_v3  ;;  %3014 = vmatpush3.bf16.msra.mxu1 %v3013_v26  ;;  %v1833_v37 = vcombine.high %v1538_v31, %v1538_v31  ;;  %v4728_v52 = vrot.slane %v1538_v31, %v4417_v50  ;;  %v1702_v43 = vld [vmem:[%s5134_s8 + $0x510] sm:$0xff]  ;;  %v1703_v26 = vld [vmem:[%s5134_s8 + $0x518] sm:$0xff]  ;;  %v1704_v3 = vld [vmem:[%s5134_s8 + $0x520] sm:$0xff] }
 0x3d5   :  { %3016 = vmatprep.subr.bf16.mxu1 %v3015_v5  ;;  %v3035_v5 = vpack.c.bf16 %v1689_v44, %v1688_v61  ;;  %v1725_v31 = vld [vmem:[%s5134_s8 + $0x5c8] sm:$0xff]  ;;  %v1711_v10 = vld [vmem:[%s5134_s8 + $0x558] sm:$0xff]  ;;  %v1698_v44 = vld [vmem:[%s5134_s8 + $0x4f0] sm:$0xff] }
 0x3d6   :  { %2986 = vmatpush3.bf16.msra.mxu0 %v2985_v36  ;;  %v4743_v28 = vrot.slane %v1833_v37, %v4417_v50  ;;  %v1848_v14 = vcombine.high %v4728_v52, %v4728_v52  ;;  %v3065_v36 = vpack.c.bf16 %v1703_v26, %v1702_v43  ;;  %v3045_v37 = vpack.c.bf16 %v1677_v46, %v1676_v45  ;;  %v1729_v59 = vld [vmem:[%s5134_s8 + $0x5e8] sm:$0xff]  ;;  %v1712_v26 = vld [vmem:[%s5134_s8 + $0x560] sm:$0xff]  ;;  %v1682_v25 = vld [vmem:[%s5134_s8 + $0x470] sm:$0xff] }
 0x3d7   :  { %2988 = vmatprep.subr.bf16.mxu0 %v2987_v48  ;;  %v1705_v48 = vld [vmem:[%s5134_s8 + $0x528] sm:$0xff]  ;;  %v1683_v27 = vld [vmem:[%s5134_s8 + $0x478] sm:$0xff] }
 0x3d8   :  { %3018 = vmatpush3.bf16.msra.mxu1 %v3017_v57  ;;  %v1849_v6 = vcombine.high %v4743_v28, %v4743_v28  ;;  %v1723_v57 = vld [vmem:[%s5134_s8 + $0x5b8] sm:$0xff]  ;;  %v3069_v56 = vpack.c.bf16 %v1705_v48, %v1704_v3  ;;  %v1714_v48 = vld [vmem:[%s5134_s8 + $0x570] sm:$0xff] }
 0x3d9   :  { %3020 = vmatprep.subr.bf16.mxu1 %v3019_v12  ;;  %v1675_v12 = vld [vmem:[%s5134_s8 + $0x438] sm:$0xff]  ;;  %v3071_v18 = vpack.c.bf16 %v1723_v57, %v1722_v60  ;;  %v3057_v60 = vpack.c.bf16 %v1683_v27, %v1682_v25 }
 0x3da   :  { %2990 = vmatpush3.bf16.msra.mxu0 %v2989_v17  ;;  %v1693_v17 = vld [vmem:[%s5134_s8 + $0x4c8] sm:$0xff]  ;;  %v3041_v24 = vpack.c.bf16 %v1675_v12, %v1674_v34  ;;  %v1732_v34 = vld [vmem:[%s5134_s8 + $0x600] sm:$0xff]  ;;  %v1735_v45 = vld [vmem:[%s5134_s8 + $0x618] sm:$0xff] }
 0x3db   :  { %2992 = vmatprep.subr.bf16.mxu0 %v2991_v8  ;;  %v1707_v8 = vld [vmem:[%s5134_s8 + $0x538] sm:$0xff]  ;;  %v1733_v12 = vld [vmem:[%s5134_s8 + $0x608] sm:$0xff] }
 0x3dc   :  { %3022 = vmatpush3.bf16.msra.mxu1 %v3021_v41  ;;  %v3043_v41 = vpack.c.bf16 %v1693_v17, %v1692_v23  ;;  %v1750_v17 = vld [vmem:[%s5134_s8 + $0x690] sm:$0xff]  ;;  %v1767_v51 = vld [vmem:[%s5134_s8 + $0x718] sm:$0xff] }
 0x3dd   :  { %3024 = vmatprep.subr.bf16.mxu1 %v3023_v47  ;;  %v3073_v47 = vpack.c.bf16 %v1707_v8, %v1706_v21  ;;  %v1764_v21 = vld [vmem:[%s5134_s8 + $0x700] sm:$0xff]  ;;  %v1765_v8 = vld [vmem:[%s5134_s8 + $0x708] sm:$0xff]  ;;  %v1743_v25 = vld [vmem:[%s5134_s8 + $0x658] sm:$0xff] }
 0x3de   :  { %2994 = vmatpush3.bf16.msra.mxu0 %v2993_v22  ;;  %v3075_v22 = vpack.c.bf16 %v1725_v31, %v1724_v20 }
 0x3df   :  { %3028 = vmatprep.subr.bf16.mxu0 %v3027_v0  ;;  %v1726_v0 = vld [vmem:[%s5134_s8 + $0x5d0] sm:$0xff] }
 0x3e0   :  { %3026 = vmatpush3.bf16.msra.mxu1 %v3025_v15  ;;  %v1678_v15 = vld [vmem:[%s5134_s8 + $0x450] sm:$0xff]  ;;  %v3079_v29 = vpack.c.bf16 %v1727_v42, %v1726_v0  ;;  %v1736_v0 = vld [vmem:[%s5134_s8 + $0x620] sm:$0xff]  ;;  %v1737_v42 = vld [vmem:[%s5134_s8 + $0x628] sm:$0xff] }
 0x3e1   :  { %2090 = vmatmul.mubr.f32.vlgmr.msra.gmra.mrb[18].mxu0 %v4580_v19  ;;  %3060 = vmatprep.subr.bf16.mxu1 %v3059_v55  ;;  %v1720_v19 = vld [vmem:[%s5134_s8 + $0x5a0] sm:$0xff]  ;;  %v3049_v32 = vpack.c.bf16 %v1679_v53, %v1678_v15  ;;  %v1754_v15 = vld [vmem:[%s5134_s8 + $0x6b0] sm:$0xff] }
 0x3e2   :  { %3030 = vmatpush3.bf16.msra.mxu0 %v3029_v33  ;;  %2229 = vmatprep.mubr.f32.mxu0 %v1848_v14  ;;  %v3067_v9 = vpack.c.bf16 %v1721_v38, %v1720_v19  ;;  %v1696_v55 = vld [vmem:[%s5134_s8 + $0x4e0] sm:$0xff]  ;;  %v1710_v33 = vld [vmem:[%s5134_s8 + $0x550] sm:$0xff]  ;;  %v1731_v38 = vld [vmem:[%s5134_s8 + $0x5f8] sm:$0xff] }
 0x3e3   :  { %2160 = vmatmul.mubr.f32.vlgmr.msra.gmra.mrb[10].mxu1 %v4597_v1  ;;  %3032 = vmatprep.subr.bf16.mxu0 %v3031_v58  ;;  %v1691_v1 = vld [vmem:[%s5134_s8 + $0x4b8] sm:$0xff]  ;;  %v1728_v58 = vld [vmem:[%s5134_s8 + $0x5e0] sm:$0xff]  ;;  %v3051_v4 = vpack.c.bf16 %v1697_v49, %v1696_v55  ;;  %v3081_v61 = vpack.c.bf16 %v1711_v10, %v1710_v33  ;;  %v1730_v19 = vld [vmem:[%s5134_s8 + $0x5f0] sm:$0xff]  ;;  %v3101_v55 = vpack.c.bf16 %v1737_v42, %v1736_v0 }
 0x3e4   :  { %3062 = vmatpush3.bf16.msra.mxu1 %v3061_v11  ;;  %2299 = vmatprep.mubr.f32.mxu1 %v1849_v6  ;;  %v3039_v39 = vpack.c.bf16 %v1691_v1, %v1690_v16  ;;  %v1680_v14 = vld [vmem:[%s5134_s8 + $0x460] sm:$0xff]  ;;  %v1681_v11 = vld [vmem:[%s5134_s8 + $0x468] sm:$0xff]  ;;  %v3083_v43 = vpack.c.bf16 %v1729_v59, %v1728_v58  ;;  %v3087_v3 = vpack.c.bf16 %v1731_v38, %v1730_v19  ;;  %v1739_v33 = vld [vmem:[%s5134_s8 + $0x638] sm:$0xff] }
 0x3e5   :  { %3064 = vmatprep.subr.bf16.mxu1 %v3063_v62  ;;  %v1699_v62 = vld [vmem:[%s5134_s8 + $0x4f8] sm:$0xff]  ;;  %v1713_v6 = vld [vmem:[%s5134_s8 + $0x568] sm:$0xff]  ;;  %v1748_v1 = vld [vmem:[%s5134_s8 + $0x680] sm:$0xff] }
 0x3e6   :  { %3034 = vmatpush3.bf16.msra.mxu0 %v3033_v40  ;;  %v3053_v40 = vpack.c.bf16 %v1681_v11, %v1680_v14  ;;  %v3085_v16 = vpack.c.bf16 %v1713_v6, %v1712_v26  ;;  %v1768_v53 = vld [vmem:[%s5134_s8 + $0x720] sm:$0xff]  ;;  %v1757_v58 = vld [vmem:[%s5134_s8 + $0x6c8] sm:$0xff]  ;;  %v1770_v59 = vld [vmem:[%s5134_s8 + $0x730] sm:$0xff] }
 0x3e7   :  { %3036 = vmatprep.subr.bf16.mxu0 %v3035_v5  ;;  %v3055_v5 = vpack.c.bf16 %v1699_v62, %v1698_v44  ;;  %v1741_v44 = vld [vmem:[%s5134_s8 + $0x648] sm:$0xff]  ;;  %v1759_v26 = vld [vmem:[%s5134_s8 + $0x6d8] sm:$0xff]  ;;  %v1772_v6 = vld [vmem:[%s5134_s8 + $0x740] sm:$0xff] }
 0x3e8   :  { %3066 = vmatpush3.bf16.msra.mxu1 %v3065_v36  ;;  %v1539_v36 = vld [vmem:[#allocation3 + $0x18] sm:$0xff]  ;;  %v1786_v0 = vld [vmem:[%s5134_s8 + $0x7b0] sm:$0xff] }
 0x3e9   :  { %3068 = vmatprep.subr.bf16.mxu1 %v3067_v9  ;;  %v1749_v9 = vld [vmem:[%s5134_s8 + $0x688] sm:$0xff]  ;;  %v1850_v57 = vcombine.high %v1539_v36, %v1539_v36  ;;  %v4926_v23 = vrot.slane %v1539_v36, %v4417_v50  ;;  %v1760_v36 = vld [vmem:[%s5134_s8 + $0x6e0] sm:$0xff]  ;;  %v1787_v42 = vld [vmem:[%s5134_s8 + $0x7b8] sm:$0xff] }
 0x3ea   :  { %3038 = vmatpush3.bf16.msra.mxu0 %v3037_v13  ;;  %v1715_v13 = vld [vmem:[%s5134_s8 + $0x578] sm:$0xff] }
 0x3eb   :  { %3040 = vmatprep.subr.bf16.mxu0 %v3039_v39  ;;  %v3091_v39 = vpack.c.bf16 %v1749_v9, %v1748_v1  ;;  %v4941_v20 = vrot.slane %v1850_v57, %v4417_v50  ;;  %v1865_v46 = vcombine.high %v4926_v23, %v4926_v23  ;;  %v1752_v50 = vld [vmem:[%s5134_s8 + $0x6a0] sm:$0xff]  ;;  %v1774_v1 = vld [vmem:[%s5134_s8 + $0x750] sm:$0xff]  ;;  %v1775_v9 = vld [vmem:[%s5134_s8 + $0x758] sm:$0xff] }
 0x3ec   :  { %3070 = vmatpush3.bf16.msra.mxu1 %v3069_v56  ;;  %v3089_v56 = vpack.c.bf16 %v1715_v13, %v1714_v48  ;;  %v1744_v13 = vld [vmem:[%s5134_s8 + $0x660] sm:$0xff]  ;;  %v3139_v57 = vpack.c.bf16 %v1775_v9, %v1774_v1 }
 0x3ed   :  { %3072 = vmatprep.subr.bf16.mxu1 %v3071_v18  ;;  %v1751_v18 = vld [vmem:[%s5134_s8 + $0x698] sm:$0xff]  ;;  %v1866_v30 = vcombine.high %v4941_v20, %v4941_v20 }
 0x3ee   :  { %3042 = vmatpush3.bf16.msra.mxu0 %v3041_v24  ;;  %v3093_v24 = vpack.c.bf16 %v1733_v12, %v1732_v34  ;;  %v3095_v31 = vpack.c.bf16 %v1751_v18, %v1750_v17  ;;  %v1763_v34 = vld [vmem:[%s5134_s8 + $0x6f8] sm:$0xff]  ;;  %v1776_v12 = vld [vmem:[%s5134_s8 + $0x760] sm:$0xff] }
 0x3ef   :  { %3044 = vmatprep.subr.bf16.mxu0 %v3043_v41  ;;  %v1734_v41 = vld [vmem:[%s5134_s8 + $0x610] sm:$0xff] }
 0x3f0   :  { %3074 = vmatpush3.bf16.msra.mxu1 %v3073_v47  ;;  %v3124_v47 = vpack.c.bf16 %v1765_v8, %v1764_v21  ;;  %v1746_v21 = vld [vmem:[%s5134_s8 + $0x670] sm:$0xff]  ;;  %v1747_v8 = vld [vmem:[%s5134_s8 + $0x678] sm:$0xff] }
 0x3f1   :  { %3076 = vmatprep.subr.bf16.mxu1 %v3075_v22  ;;  %v1766_v22 = vld [vmem:[%s5134_s8 + $0x710] sm:$0xff] }
 0x3f2   :  { %3046 = vmatpush3.bf16.msra.mxu0 %v3045_v37  ;;  %v3097_v37 = vpack.c.bf16 %v1735_v45, %v1734_v41  ;;  %v1779_v41 = vld [vmem:[%s5134_s8 + $0x778] sm:$0xff]  ;;  %v3121_v45 = vpack.c.bf16 %v1747_v8, %v1746_v21 }
 0x3f3   :  { %3048 = vmatprep.subr.bf16.mxu0 %v3047_v2  ;;  %v3127_v2 = vpack.c.bf16 %v1767_v51, %v1766_v22  ;;  %v1782_v22 = vld [vmem:[%s5134_s8 + $0x790] sm:$0xff]  ;;  %v1783_v51 = vld [vmem:[%s5134_s8 + $0x798] sm:$0xff] }
 0x3f4   :  { %3078 = vmatpush3.bf16.msra.mxu1 %v3077_v54  ;;  %v1769_v54 = vld [vmem:[%s5134_s8 + $0x728] sm:$0xff] }
 0x3f5   :  { %3080 = vmatprep.subr.bf16.mxu1 %v3079_v29  ;;  %v1738_v29 = vld [vmem:[%s5134_s8 + $0x630] sm:$0xff]  ;;  %v3130_v10 = vpack.c.bf16 %v1769_v54, %v1768_v53  ;;  %v2516_v53 = vld [vmem:[%s5135_s9] ss:$0 sm:$0xff] }
 0x3f6   :  { %3050 = vmatpush3.bf16.msra.mxu0 %v3049_v32  ;;  %v1756_v32 = vld [vmem:[%s5134_s8 + $0x6c0] sm:$0xff]  ;;  %v3105_v14 = vpack.c.bf16 %v1739_v33, %v1738_v29 }
 0x3f7   :  { %3052 = vmatprep.subr.bf16.mxu0 %v3051_v4  ;;  %v1771_v4 = vld [vmem:[%s5134_s8 + $0x738] sm:$0xff]  ;;  %v3107_v11 = vpack.c.bf16 %v1757_v58, %v1756_v32 }
 0x3f8   :  { %3082 = vmatpush3.bf16.msra.mxu1 %v3081_v61  ;;  %v1740_v61 = vld [vmem:[%s5134_s8 + $0x640] sm:$0xff]  ;;  %v3133_v62 = vpack.c.bf16 %v1771_v4, %v1770_v59 }
 0x3f9   :  { %3084 = vmatprep.subr.bf16.mxu1 %v3083_v43  ;;  %v1758_v43 = vld [vmem:[%s5134_s8 + $0x6d0] sm:$0xff]  ;;  %v3109_v19 = vpack.c.bf16 %v1741_v44, %v1740_v61 }
 0x3fa   :  { %3054 = vmatpush3.bf16.msra.mxu0 %v3053_v40  ;;  %v1773_v40 = vld [vmem:[%s5134_s8 + $0x748] sm:$0xff]  ;;  %v3111_v38 = vpack.c.bf16 %v1759_v26, %v1758_v43 }
 0x3fb   :  { %3056 = vmatprep.subr.bf16.mxu0 %v3055_v5  ;;  %v1742_v5 = vld [vmem:[%s5134_s8 + $0x650] sm:$0xff]  ;;  %v3136_v27 = vpack.c.bf16 %v1773_v40, %v1772_v6 }
 0x3fc   :  { %3086 = vmatpush3.bf16.msra.mxu1 %v3085_v16  ;;  %v1761_v16 = vld [vmem:[%s5134_s8 + $0x6e8] sm:$0xff] }
 0x3fd   :  { %3088 = vmatprep.subr.bf16.mxu1 %v3087_v3  ;;  %v3113_v3 = vpack.c.bf16 %v1743_v25, %v1742_v5  ;;  %v3115_v48 = vpack.c.bf16 %v1761_v16, %v1760_v36 }
 0x3fe   :  { %3058 = vmatpush3.bf16.msra.mxu0 %v3057_v60  ;;  %v1745_v60 = vld [vmem:[%s5134_s8 + $0x668] sm:$0xff] }
 0x3ff   :  { %3092 = vmatprep.subr.bf16.mxu0 %v3091_v39  ;;  %v1762_v39 = vld [vmem:[%s5134_s8 + $0x6f0] sm:$0xff]  ;;  %v3117_v17 = vpack.c.bf16 %v1745_v60, %v1744_v13 }
 0x400   :  { %3090 = vmatpush3.bf16.msra.mxu1 %v3089_v56  ;;  %v1777_v56 = vld [vmem:[%s5134_s8 + $0x768] sm:$0xff]  ;;  %v3119_v18 = vpack.c.bf16 %v1763_v34, %v1762_v39 }
 0x401   :  { %2230 = vmatmul.mubr.f32.vlgmr.msra.gmra.mrb[20].mxu0 %v4728_v52  ;;  %3123 = vmatprep.subr.bf16.mxu1 %v3240_v35  ;;  %v3099_v52 = vpack.c.bf16 %v1753_v63, %v1752_v50  ;;  %v1781_v50 = vld [vmem:[%s5134_s8 + $0x788] sm:$0xff] }
 0x402   :  { %3094 = vmatpush3.bf16.msra.mxu0 %v3093_v24  ;;  %2369 = vmatprep.mubr.f32.mxu0 %v1865_v46  ;;  %v3142_v24 = vpack.c.bf16 %v1777_v56, %v1776_v12 }
 0x403   :  { %2300 = vmatmul.mubr.f32.vlgmr.msra.gmra.mrb[12].mxu1 %v4743_v28  ;;  %3096 = vmatprep.subr.bf16.mxu0 %v3095_v31  ;;  %v1755_v28 = vld [vmem:[%s5134_s8 + $0x6b8] sm:$0xff]  ;;  %v1778_v31 = vld [vmem:[%s5134_s8 + $0x770] sm:$0xff] }
 0x404   :  { %3125 = vmatpush1.bf16.msra.mxu1 %v3124_v47  ;;  %2517 = vmatprep.mubr.msk.f32.mxu1 %vm1882_vm14, %v1866_v30  ;;  %v3103_v49 = vpack.c.bf16 %v1755_v28, %v1754_v15  ;;  %v3145_v46 = vpack.c.bf16 %v1779_v41, %v1778_v31  ;;  %v1780_v47 = vld [vmem:[%s5134_s8 + $0x780] sm:$0xff]  ;;  %v3151_v30 = vpack.c.bf16 %v1783_v51, %v1782_v22 }
 0x405   :  { %3126 = vmatprep.subr.bf16.mxu1 %v3240_v35  ;;  %v3148_v63 = vpack.c.bf16 %v1781_v50, %v1780_v47  ;;  %v1788_v15 = vld [vmem:[%s5134_s8 + $0x7c0] sm:$0xff] }
 0x406   :  { %3098 = vmatpush3.bf16.msra.mxu0 %v3097_v37  ;;  %v1784_v37 = vld [vmem:[%s5134_s8 + $0x7a0] sm:$0xff] }
 0x407   :  { %3100 = vmatprep.subr.bf16.mxu0 %v3099_v52 }
 0x408   :  { %3128 = vmatpush1.bf16.msra.mxu1 %v3127_v2  ;;  %v3157_v2 = vpack.c.bf16 %v1787_v42, %v1786_v0 }
 0x409   :  { %3129 = vmatprep.subr.bf16.mxu1 %v3240_v35 }
 0x40a   :  { %3102 = vmatpush3.bf16.msra.mxu0 %v3101_v55 }
 0x40b   :  { %3104 = vmatprep.subr.bf16.mxu0 %v3103_v49 }
 0x40c   :  { %3131 = vmatpush1.bf16.msra.mxu1 %v3130_v10 }
 0x40d   :  { %3132 = vmatprep.subr.bf16.mxu1 %v3240_v35 }
 0x40e   :  { %3106 = vmatpush3.bf16.msra.mxu0 %v3105_v14 }
 0x40f   :  { %3108 = vmatprep.subr.bf16.mxu0 %v3107_v11 }
 0x410   :  { %3134 = vmatpush1.bf16.msra.mxu1 %v3133_v62 }
 0x411   :  { %3135 = vmatprep.subr.bf16.mxu1 %v3240_v35 }
 0x412   :  { %3110 = vmatpush3.bf16.msra.mxu0 %v3109_v19 }
 0x413   :  { %3112 = vmatprep.subr.bf16.mxu0 %v3111_v38 }
 0x414   :  { %3137 = vmatpush1.bf16.msra.mxu1 %v3136_v27 }
 0x415   :  { %3138 = vmatprep.subr.bf16.mxu1 %v3240_v35 }
 0x416   :  { %3114 = vmatpush3.bf16.msra.mxu0 %v3113_v3 }
 0x417   :  { %3116 = vmatprep.subr.bf16.mxu0 %v3115_v48 }
 0x418   :  { %3140 = vmatpush1.bf16.msra.mxu1 %v3139_v57 }
 0x419   :  { %3141 = vmatprep.subr.bf16.mxu1 %v3240_v35 }
 0x41a   :  { %3118 = vmatpush3.bf16.msra.mxu0 %v3117_v17 }
 0x41b   :  { %3120 = vmatprep.subr.bf16.mxu0 %v3119_v18 }
 0x41c   :  { %3143 = vmatpush1.bf16.msra.mxu1 %v3142_v24 }
 0x41d   :  { %3144 = vmatprep.subr.bf16.mxu1 %v3240_v35 }
 0x41e   :  { %3122 = vmatpush3.bf16.msra.mxu0 %v3121_v45 }
 0x420   :  { %3146 = vmatpush1.bf16.msra.mxu1 %v3145_v46 }
 0x421   :  { %2370 = vmatmul.mubr.f32.vlgmr.msra.gmra.mrb[22].mxu0 %v4926_v23  ;;  %3147 = vmatprep.subr.bf16.mxu1 %v3240_v35  ;;  %v1785_v23 = vld [vmem:[%s5134_s8 + $0x7a8] sm:$0xff]  ;;  %s3241_s8 = smov [#allocation4]  }
 0x422   :  { %v3154_v52 = vpack.c.bf16 %v1785_v23, %v1784_v37  ;;  %s2452_s9 = sshll.u32 %s3241_s8, 4  ;;  %s2453_s9 = int_to_ptr.vmem [resolvable:$true] %s2452_s9 }
 0x423   :  { %s3195_s28 = scalar_lea.vmem %s2453_s9, 32  ;;  %p3200_p1 = scmp.lt.s32.totalorder %s2453_s9, %s2453_s9 }
 0x424   :  { %3149 = vmatpush1.bf16.msra.mxu1 %v3148_v63  ;;  %p3196_p0 = scmp.ne.s32.totalorder %s2453_s9, %s3195_s28  ;;  %p3201_p2 = scmp.lt.s32.totalorder %s3195_s28, %s3195_s28 }
 0x425   :  { %3150 = vmatprep.subr.bf16.mxu1 %v3240_v35 }
 0x426   :  { %p3202_p3 = por %p3201_p2, %p3200_p1 }
 0x428   :  { %3152 = vmatpush1.bf16.msra.mxu1 %v3151_v30  ;;  %p3203_p4 = pnand %p3202_p3, %p3196_p0 }
 0x429   :  { %3153 = vmatprep.subr.bf16.mxu1 %v3240_v35 }
 0x42c   :  { %3155 = vmatpush1.bf16.msra.mxu1 %v3154_v52 }
 0x42d   :  { %3156 = vmatprep.subr.bf16.mxu1 %v3240_v35 }
 0x430   :  { %3158 = vmatpush1.bf16.msra.mxu1 %v3157_v2 }
 0x431   :  { %2423 = vmatprep.subr.mxu1 %v3219_v7 }
 0x434   :  { %2424 = vmatpush1.msra.mxu1 %v1788_v15 }
 0x435   :  { %2440 = vmatmul.mubr.f32.vlgmr.msra.gmra.mrb[14].mxu1 %v4941_v20 }
 0x494   :  { %v2550_v28 = vpop.f32.mrb[16].mxu0 }
 0x495   :  { %v2551_v54 = vpop.f32.mrb[17].mxu0 }
 0x496   :  { %v2552_v55 = vadd.f32 %v2551_v54, %v2550_v28  ;;  %v2585_v49 = vpop.f32.mrb[8].mxu1 }
 0x497   :  { %v2586_v29 = vpop.f32.mrb[9].mxu1 }
 0x498   :  { %v1952_v35 = vadd.f32 %v2552_v55, %v2516_v53  ;;  %v2587_v33 = vadd.f32 %v2586_v29, %v2585_v49 }
 0x49a   :  { %v2022_v10 = vadd.f32 %v2587_v33, %v1952_v35 }
 0x4b4   :  { %v2620_v7 = vpop.f32.mrb[18].mxu0 }
 0x4b5   :  { %v2621_v32 = vpop.f32.mrb[19].mxu0 }
 0x4b6   :  { %v2622_v58 = vadd.f32 %v2621_v32, %v2620_v7  ;;  %v2655_v59 = vpop.f32.mrb[10].mxu1 }
 0x4b7   :  { %v2656_v4 = vpop.f32.mrb[11].mxu1 }
 0x4b8   :  { %v2092_v14 = vadd.f32 %v2622_v58, %v2022_v10  ;;  %v2657_v11 = vadd.f32 %v2656_v4, %v2655_v59 }
 0x4ba   :  { %v2162_v20 = vadd.f32 %v2657_v11, %v2092_v14 }
 0x4d4   :  { %v2690_v61 = vpop.f32.mrb[20].mxu0 }
 0x4d5   :  { %v2691_v44 = vpop.f32.mrb[21].mxu0 }
 0x4d6   :  { %v2692_v62 = vadd.f32 %v2691_v44, %v2690_v61  ;;  %v2725_v43 = vpop.f32.mrb[12].mxu1 }
 0x4d7   :  { %v2726_v26 = vpop.f32.mrb[13].mxu1 }
 0x4d8   :  { %v2232_v6 = vadd.f32 %v2692_v62, %v2162_v20  ;;  %v2727_v40 = vadd.f32 %v2726_v26, %v2725_v43 }
 0x4da   :  { %v2302_v19 = vadd.f32 %v2727_v40, %v2232_v6 }
 0x4f4   :  { %v2760_v38 = vpop.f32.mrb[22].mxu0 }
 0x4f5   :  { %v2761_v5 = vpop.f32.mrb[23].mxu0 }
 0x4f6   :  { %v2762_v25 = vadd.f32 %v2761_v5, %v2760_v38 }
 0x4f8   :  { %v2372_v27 = vadd.f32 %v2762_v25, %v2302_v19 }
 0x508   :  { %v2441_v36 = vpop.f32.mrb[14].mxu1 }
 0x509   :  { %v2442_v16 = vadd.f32 %v2441_v36, %v2372_v27  ;;  %v2443_v1 = vpop.f32.mrb[15].mxu1 }
 0x50b   :  { %2445 = vst [vmem:[#allocation4] sm:$0x3] %v2442_v16 }
 0x50c   :  { %3206 = shalt.err (!%p3203_p4)
}
 0x50d   :  { %s3207_s20 = scalar_lea.hbm %s5137_s11, 32 }
 0x50e   :  { %p3208_p5 = scmp.ne.s32.totalorder %s5137_s11, %s3207_s20  ;;  %p3211_p6 = scmp.lt.u32.totalorder %s3207_s20, %s5137_s11 }
 0x510   :  { %p3213_p7 = pnand %p3211_p6, %p3208_p5 }
 0x512   :  { %3216 = shalt.err (!%p3213_p7)
}
 0x513   :  { %2455 = dma.vmem_to_hbm [thread:$0]  %s2453_s9, 32, %s5137_s11, [#allocation5]  }
 0x514   :  { %3217 = dma.done.wait [#allocation5], 32  }
 0x515   :  { %3218 = vsyncadd [#allocation5], 4294967264 }
 0x516   :  { %2459 = vsyncpa [#allocation5], 1 }

</bundles_post_ra>
